<compile_context>
chip_gen: v7x
topology: tpu7x:2x2x1
jax: 0.10.0
libtpu: 0.0.40
codegen_flags: <defaults>
</compile_context>

<pallas_src>
import functools
import math

import jax
import jax.numpy as jnp
from jax.experimental import pallas as pl
from jax.experimental.pallas import tpu as pltpu


# ----------------------------------------------------------------------------
# In-kernel series decomposition (res branch): v - moving_avg(v)
# ----------------------------------------------------------------------------
def _decomp_res(v, pad_ref, kernel_size):
    """res = v - moving_avg(v), moving_avg == edge-replicated AvgPool1d.

    Implemented as a kernel_size-tap windowed sum over an edge-replicated
    padded copy held in VMEM scratch (sublane-shifted loads + VPU adds) — no
    dense (L, L) operator, no MXU work.
    """
    bb, L, D = v.shape
    pad = (kernel_size - 1) // 2
    pad_ref[:, pad:pad + L, :] = v
    if pad > 0:
        pad_ref[:, 0:pad, :] = jnp.broadcast_to(v[:, 0:1, :], (bb, pad, D))
        pad_ref[:, pad + L:pad + L + pad, :] = jnp.broadcast_to(
            v[:, L - 1:L, :], (bb, pad, D))
    win = pad_ref[:, 0:L, :]
    # TODO(synk): replace the linear tap chain with a log2(k) doubling tree of
    # shifted partial sums if the VPU add chain ever shows up in profiles.
    for t in range(1, kernel_size):
        win = win + pad_ref[:, t:t + L, :]
    return v - win * (1.0 / kernel_size)


# ----------------------------------------------------------------------------
# Kernel
# ----------------------------------------------------------------------------
def _encoder_layer_kernel(x_ref, wqkv_ref, wo_ref, w1t_ref, w2t_ref,
                          res_ref, attn_ref,
                          q_sc, ctx_sc, pad_sc,
                          *, kernel_size, tq):
    """One block of bb batch elements per grid step.

    Weight matmuls run on the flattened (bb*L, D) slab (fills the MXU M dim);
    attention is a batched einsum tiled over query rows; the decompositions
    are k-tap windowed sums.  bf16 MXU operands, f32 accumulation, f32
    element-wise math.
    """
    bb, L, D = x_ref.shape
    x = x_ref[...]                                              # (bb, L, D) f32

    # ---- fused QKV projection on the flattened (bb*L, D) slab --------------
    x_flat_bf = x.reshape(bb * L, D).astype(jnp.bfloat16)
    qkv = jnp.dot(x_flat_bf, wqkv_ref[...],
                  preferred_element_type=jnp.float32)           # (bb*L, 3D) f32
    qkv = qkv.astype(jnp.bfloat16).reshape(bb, L, 3 * D)        # one cast total
    q_sc[...] = qkv[:, :, 0:D]            # 1/sqrt(d_model) folded into Wq
    k_bf = qkv[:, :, D:2 * D]
    v_bf = qkv[:, :, 2 * D:3 * D]

    # ---- attention, tiled over query rows (live L^2 work is tq*L, not L*L) -
    def q_tile_body(ti, carry):
        s = pl.multiple_of(ti * tq, tq)
        q_t = q_sc[:, pl.ds(s, tq), :]                          # (bb, tq, D) bf16
        scores = jnp.einsum('bqd,bkd->bqk', q_t, k_bf,
                            preferred_element_type=jnp.float32)  # (bb, tq, L)
        m = jnp.max(scores, axis=-1, keepdims=True)
        p = jnp.exp(scores - m)
        inv = pl.reciprocal(jnp.sum(p, axis=-1, keepdims=True), approx=True)
        attn_t = (p * inv).astype(jnp.bfloat16)
        ctx_t = jnp.einsum('bqk,bkd->bqd', attn_t, v_bf,
                           preferred_element_type=jnp.float32)   # (bb, tq, D)
        attn_ref[:, pl.ds(s, tq), :] = attn_t.astype(attn_ref.dtype)
        ctx_sc[:, pl.ds(s, tq), :] = ctx_t.astype(ctx_sc.dtype)
        return carry

    jax.lax.fori_loop(0, L // tq, q_tile_body, 0)

    # ---- output projection + first residual (dropout == identity) ----------
    new_x = jnp.dot(ctx_sc[...].reshape(bb * L, D), wo_ref[...],
                    preferred_element_type=jnp.float32)          # (bb*L, D) f32
    x1 = x + new_x.reshape(bb, L, D)

    # ---- series_decomp 1 ----------------------------------------------------
    x1d = _decomp_res(x1, pad_sc, kernel_size)                   # (bb, L, D) f32

    # ---- FFN: two kernel_size=1 Conv1d layers (channel matmuls) + ReLU ------
    x1d_flat_bf = x1d.reshape(bb * L, D).astype(jnp.bfloat16)
    y = jnp.dot(x1d_flat_bf, w1t_ref[...],
                preferred_element_type=jnp.float32)              # (bb*L, d_ff)
    y = jnp.maximum(y, 0.0)
    y = jnp.dot(y.astype(jnp.bfloat16), w2t_ref[...],
                preferred_element_type=jnp.float32)              # (bb*L, D)

    # ---- series_decomp 2 ----------------------------------------------------
    z = x1d + y.reshape(bb, L, D)
    res = _decomp_res(z, pad_sc, kernel_size)
    res_ref[...] = res.astype(res_ref.dtype)


# ----------------------------------------------------------------------------
# Wrapper helpers: generation-aware block / tile / VMEM selection
# ----------------------------------------------------------------------------
def _tpu_generation():
    try:
        kind = jax.devices()[0].device_kind.lower()
    except Exception:
        return "unknown"
    if "v7" in kind or "7x" in kind:
        return "v7x"
    if "v6" in kind:
        return "v6e"
    if "v5e" in kind or "v5 lite" in kind or "v5litepod" in kind:
        return "v5e"
    return "other"


def _pick_q_tile(L, target=256):
    """Largest divisor of L that is <= target (query-row tile)."""
    tq = 1
    for cand in range(1, min(L, target) + 1):
        if L % cand == 0:
            tq = cand
    return tq


def _block_vmem_bytes(bb, L, D, d_ff, kernel_size, tq):
    """Rough per-block VMEM residency estimate (I/O, weights, scratch, live)."""
    pad = (kernel_size - 1) // 2
    io = 2 * (2 * bb * L * D * 4 + bb * L * L * 2)           # x/res f32 + attn bf16
    weights = 2 * 2 * (3 * D * D + D * D + 2 * D * d_ff)     # bf16, double-buffered
    scratch = 2 * bb * L * D * 2 + bb * (L + 2 * pad) * D * 4
    live = (bb * L * 3 * D * 6                               # qkv f32 + bf16
            + 3 * bb * tq * L * 4                            # scores/p/attn tile
            + bb * L * d_ff * 4                              # FFN hidden
            + 4 * bb * L * D * 4)                            # x1 / x1d / z / new_x
    return io + weights + scratch + live


def _pick_batch_block(B, L, D, d_ff, kernel_size, tq, gen):
    """bb*L targets >=512 MXU rows (>=256 on v5e), bounded by VMEM budget;
    on v7x keep n_blocks >= 2 so both TensorCores get work."""
    target_rows = 256 if gen == "v5e" else 512
    budget = (48 if gen == "v7x" else 96) * 1024 * 1024
    divisors = [d for d in range(1, B + 1) if B % d == 0]
    bb = 1
    for d in divisors:
        if (d * L <= max(target_rows, L)
                and _block_vmem_bytes(d, L, D, d_ff, kernel_size, tq) <= budget):
            bb = d
    if gen == "v7x" and B >= 2:
        while B // bb < 2 and bb > 1:
            smaller = [d for d in divisors if d < bb]
            bb = smaller[-1] if smaller else 1
    return bb


# ----------------------------------------------------------------------------
# Wrapper
# ----------------------------------------------------------------------------
def encoder_layer_forward(x, params, kernel_size):
    B, L, D = x.shape
    d_ff = params["w1t"].shape[1]
    assert kernel_size % 2 == 1, "moving_avg kernel_size must be odd"
    pad = (kernel_size - 1) // 2

    gen = _tpu_generation()
    tq = _pick_q_tile(L)
    bb = _pick_batch_block(B, L, D, d_ff, kernel_size, tq, gen)
    n_blocks = B // bb

    # Fold 1/sqrt(d_model) into Wq and fuse Wq|Wk|Wv into one (D, 3D) bf16 slab.
    # TODO(synk): at production sizes pad d_model/d_ff/L to multiples of
    # (128, 8) in the wrapper for lane-dense stores and free reshapes.
    scale = 1.0 / math.sqrt(D)
    wqkv = jnp.concatenate(
        [params["wq"] * scale, params["wk"], params["wv"]], axis=1
    ).astype(jnp.bfloat16)                                   # (D, 3D)
    wo = params["wo"].astype(jnp.bfloat16)
    w1t = params["w1t"].astype(jnp.bfloat16)
    w2t = params["w2t"].astype(jnp.bfloat16)

    flops = (2 * B * L * (4 * D * D + 2 * L * D + 2 * D * d_ff)
             + 4 * B * L * kernel_size * D)
    cost = pl.CostEstimate(
        flops=flops,
        transcendentals=B * L * (L + 1),
        bytes_accessed=(B * L * D * 4            # x in
                        + B * L * D * 4          # res out
                        + B * L * L * 2          # attn out (bf16)
                        + (4 * D * D + 2 * D * d_ff) * 2))   # bf16 weights

    vmem_limit = {"v7x": 56, "v6e": 100, "v5e": 100}.get(gen, 96) * 1024 * 1024

    kernel = functools.partial(_encoder_layer_kernel,
                               kernel_size=kernel_size, tq=tq)

    res, attn = pl.pallas_call(
        kernel,
        out_shape=(jax.ShapeDtypeStruct((B, L, D), jnp.float32),
                   jax.ShapeDtypeStruct((B, L, L), jnp.bfloat16)),
        grid=(n_blocks,),
        in_specs=[
            pl.BlockSpec((bb, L, D), lambda i: (i, 0, 0)),     # x block
            pl.BlockSpec((D, 3 * D), lambda i: (0, 0)),        # fused Wqkv
            pl.BlockSpec((D, D), lambda i: (0, 0)),            # Wo
            pl.BlockSpec((D, d_ff), lambda i: (0, 0)),         # conv1 weight^T
            pl.BlockSpec((d_ff, D), lambda i: (0, 0)),         # conv2 weight^T
        ],
        out_specs=[
            pl.BlockSpec((bb, L, D), lambda i: (i, 0, 0)),     # res (f32)
            pl.BlockSpec((bb, L, L), lambda i: (i, 0, 0)),     # attn (bf16)
        ],
        scratch_shapes=[
            pltpu.VMEM((bb, L, D), jnp.bfloat16),              # q
            pltpu.VMEM((bb, L, D), jnp.bfloat16),              # ctx
            pltpu.VMEM((bb, L + 2 * pad, D), jnp.float32),     # edge-padded series
        ],
        compiler_params=pltpu.CompilerParams(
            dimension_semantics=("parallel",),
            vmem_limit_bytes=vmem_limit),
        cost_estimate=cost,
    )(x, wqkv, wo, w1t, w2t)
    return res, attn


# ----------------------------------------------------------------------------
# Pure-JAX f32 reference mirroring the PyTorch module (eval mode)
# ----------------------------------------------------------------------------
def build_avg_matrix(L, kernel_size):
    """A[i, j] = weight of x[j] in moving_avg(x)[i] (edge replication + AvgPool1d)."""
    pad = (kernel_size - 1) // 2
    idx = jnp.arange(L)[:, None] + jnp.arange(-pad, pad + 1)[None, :]
    idx = jnp.clip(idx, 0, L - 1)
    A = jnp.zeros((L, L), jnp.float32)
    A = A.at[jnp.arange(L)[:, None], idx].add(1.0 / kernel_size)
    return A


def reference_forward(x, params, kernel_size):
    B, L, D = x.shape
    A = build_avg_matrix(L, kernel_size)

    q = x @ params["wq"]
    k = x @ params["wk"]
    v = x @ params["wv"]
    scores = jnp.einsum("bld,bmd->blm", q, k) / jnp.sqrt(jnp.float32(D))
    attn = jax.nn.softmax(scores, axis=-1)
    new_x = jnp.einsum("blm,bmd->bld", attn, v) @ params["wo"]

    x1 = x + new_x
    x1 = x1 - jnp.einsum("lm,bmd->bld", A, x1)          # decomp1
    y = jnp.maximum(x1 @ params["w1t"], 0.0) @ params["w2t"]
    z = x1 + y
    res = z - jnp.einsum("lm,bmd->bld", A, z)           # decomp2
    return res, attn


if __name__ == "__main__":
    B, L, d_model, kernel_size = 2, 16, 32, 25
    d_ff = 4 * d_model

    key = jax.random.PRNGKey(0)
    ks = jax.random.split(key, 8)
    scale = 0.1
    params = {
        "wq":  scale * jax.random.normal(ks[0], (d_model, d_model), jnp.float32),
        "wk":  scale * jax.random.normal(ks[1], (d_model, d_model), jnp.float32),
        "wv":  scale * jax.random.normal(ks[2], (d_model, d_model), jnp.float32),
        "wo":  scale * jax.random.normal(ks[3], (d_model, d_model), jnp.float32),
        # conv1.weight is (d_ff, d_model, 1) in PyTorch; stored transposed (d_model, d_ff)
        "w1t": scale * jax.random.normal(ks[4], (d_model, d_ff), jnp.float32),
        # conv2.weight is (d_model, d_ff, 1); stored transposed (d_ff, d_model)
        "w2t": scale * jax.random.normal(ks[5], (d_ff, d_model), jnp.float32),
    }
    x = jax.random.normal(ks[6], (B, L, d_model), jnp.float32)

    res, attn = encoder_layer_forward(x, params, kernel_size)
    res, attn = jax.block_until_ready((res, attn))

    res_ref, attn_ref = reference_forward(x, params, kernel_size)
    # Tolerances sized for bf16 matmul operands (f32 accumulation) and the
    # bf16 attention output.
    assert jnp.allclose(res, res_ref, atol=5e-2, rtol=5e-2), (
        float(jnp.max(jnp.abs(res - res_ref))))
    assert jnp.allclose(attn.astype(jnp.float32), attn_ref,
                        atol=2e-2, rtol=2e-2), (
        float(jnp.max(jnp.abs(attn.astype(jnp.float32) - attn_ref))))

    print("KERNEL_OK")
</pallas_src>

<mosaic_0001>
module attributes {stable_mosaic.version = 11 : i64} {
  func.func @_encoder_layer_kernel(%arg0: i32, %arg1: memref<2x16x32xf32, #tpu.memory_space<vmem>>, %arg2: memref<32x96xbf16, #tpu.memory_space<vmem>>, %arg3: memref<32x32xbf16, #tpu.memory_space<vmem>>, %arg4: memref<32x128xbf16, #tpu.memory_space<vmem>>, %arg5: memref<128x32xbf16, #tpu.memory_space<vmem>>, %arg6: memref<2x16x32xf32, #tpu.memory_space<vmem>>, %arg7: memref<2x16x16xbf16, #tpu.memory_space<vmem>>, %arg8: memref<2x16x32xbf16, #tpu.memory_space<vmem>>, %arg9: memref<2x16x32xbf16, #tpu.memory_space<vmem>>, %arg10: memref<2x40x32xf32, #tpu.memory_space<vmem>>) attributes {dimension_semantics = [#tpu.dimension_semantics<parallel>], iteration_bounds = array<i64: 1>, scalar_prefetch = 0 : i64, scratch_operands = 3 : i64, tpu.core_type = #tpu.core_type<tc>, window_params = [{transform_indices = @transform_0, window_bounds = array<i64: 2, 16, 32>}, {pipeline_mode = #tpu.pipeline_mode<synchronous>, transform_indices = @transform_1, window_bounds = array<i64: 32, 96>}, {pipeline_mode = #tpu.pipeline_mode<synchronous>, transform_indices = @transform_2, window_bounds = array<i64: 32, 32>}, {pipeline_mode = #tpu.pipeline_mode<synchronous>, transform_indices = @transform_3, window_bounds = array<i64: 32, 128>}, {pipeline_mode = #tpu.pipeline_mode<synchronous>, transform_indices = @transform_4, window_bounds = array<i64: 128, 32>}, {transform_indices = @transform_5, window_bounds = array<i64: 2, 16, 32>}, {transform_indices = @transform_6, window_bounds = array<i64: 2, 16, 16>}]} {
    %c0 = arith.constant 0 : index
    %c0_0 = arith.constant 0 : index
    %c0_1 = arith.constant 0 : index
    %0 = vector.load %arg1[%c0, %c0_0, %c0_1] : memref<2x16x32xf32, #tpu.memory_space<vmem>>, vector<2x16x32xf32>
    %1 = vector.shape_cast %0 : vector<2x16x32xf32> to vector<32x32xf32>
    %2 = arith.truncf %1 : vector<32x32xf32> to vector<32x32xbf16>
    %c0_2 = arith.constant 0 : index
    %c0_3 = arith.constant 0 : index
    %3 = vector.load %arg2[%c0_2, %c0_3] : memref<32x96xbf16, #tpu.memory_space<vmem>>, vector<32x96xbf16>
    %cst = arith.constant dense<0.000000e+00> : vector<32x96xf32>
    %4 = tpu.matmul %2, %3, %cst {dimension_numbers = #tpu.dot_dimension_numbers<[1], [0], [0], [1], [0, 0, 1, 1], [], []>} : vector<32x32xbf16>, vector<32x96xbf16>, vector<32x96xf32> -> vector<32x96xf32>
    %5 = arith.truncf %4 : vector<32x96xf32> to vector<32x96xbf16>
    %6 = vector.shape_cast %5 : vector<32x96xbf16> to vector<2x16x96xbf16>
    %7 = vector.extract_strided_slice %6 {offsets = [0, 0, 0], sizes = [2, 16, 32], strides = [1, 1, 1]} : vector<2x16x96xbf16> to vector<2x16x32xbf16>
    %c0_4 = arith.constant 0 : index
    %c0_5 = arith.constant 0 : index
    %c0_6 = arith.constant 0 : index
    %8 = vector.load %arg8[%c0_4, %c0_5, %c0_6] : memref<2x16x32xbf16, #tpu.memory_space<vmem>>, vector<2x16x32xbf16>
    tpu.vector_store %arg8[%c0_4, %c0_5, %c0_6], %7 {strides = array<i32>} : memref<2x16x32xbf16, #tpu.memory_space<vmem>>, vector<2x16x32xbf16>,
    %9 = vector.extract_strided_slice %6 {offsets = [0, 0, 32], sizes = [2, 16, 32], strides = [1, 1, 1]} : vector<2x16x96xbf16> to vector<2x16x32xbf16>
    %10 = vector.extract_strided_slice %6 {offsets = [0, 0, 64], sizes = [2, 16, 32], strides = [1, 1, 1]} : vector<2x16x96xbf16> to vector<2x16x32xbf16>
    %c0_i32 = arith.constant 0 : i32
    %c16_i32 = arith.constant 16 : i32
    %11 = arith.muli %c0_i32, %c16_i32 : i32
    %12 = tpu.assume_multiple %11, 16 : i32
    %c0_7 = arith.constant 0 : index
    %13 = arith.index_cast %12 : i32 to index
    %c0_8 = arith.constant 0 : index
    %14 = vector.load %arg8[%c0_7, %13, %c0_8] : memref<2x16x32xbf16, #tpu.memory_space<vmem>>, vector<2x16x32xbf16>
    "tpu.trace_start"() <{level = 10 : i32, message = "bqd,bkd->bqk"}> : () -> ()
    %cst_9 = arith.constant dense<0.000000e+00> : vector<2x16x16xf32>
    %15 = tpu.matmul %14, %9, %cst_9 {dimension_numbers = #tpu.dot_dimension_numbers<[2], [2], [1], [1], [0, 0, 0, 1, 1, 1], [0], [0]>} : vector<2x16x32xbf16>, vector<2x16x32xbf16>, vector<2x16x16xf32> -> vector<2x16x16xf32>
    "tpu.trace_stop"() : () -> ()
    %cst_10 = arith.constant dense<0xFF800000> : vector<2x16xf32>
    %16 = vector.multi_reduction <maximumf>, %15, %cst_10 [2] : vector<2x16x16xf32> to vector<2x16xf32>
    %17 = vector.shape_cast %16 : vector<2x16xf32> to vector<2x16x1xf32>
    %18 = vector.broadcast %17 : vector<2x16x1xf32> to vector<2x16x16xf32>
    %19 = arith.subf %15, %18 : vector<2x16x16xf32>
    %20 = math.exp %19 : vector<2x16x16xf32>
    %cst_11 = arith.constant dense<0.000000e+00> : vector<2x16xf32>
    %21 = vector.multi_reduction <add>, %20, %cst_11 [2] : vector<2x16x16xf32> to vector<2x16xf32>
    %22 = vector.shape_cast %21 : vector<2x16xf32> to vector<2x16x1xf32>
    %23 = tpu.reciprocal %22 {approx = true} : vector<2x16x1xf32> -> vector<2x16x1xf32>
    %24 = vector.broadcast %23 : vector<2x16x1xf32> to vector<2x16x16xf32>
    %25 = arith.mulf %20, %24 : vector<2x16x16xf32>
    %26 = arith.truncf %25 : vector<2x16x16xf32> to vector<2x16x16xbf16>
    "tpu.trace_start"() <{level = 10 : i32, message = "bqk,bkd->bqd"}> : () -> ()
    %cst_12 = arith.constant dense<0.000000e+00> : vector<2x16x32xf32>
    %27 = tpu.matmul %26, %10, %cst_12 {dimension_numbers = #tpu.dot_dimension_numbers<[2], [1], [1], [2], [0, 0, 0, 1, 1, 2], [0], [0]>} : vector<2x16x16xbf16>, vector<2x16x32xbf16>, vector<2x16x32xf32> -> vector<2x16x32xf32>
    "tpu.trace_stop"() : () -> ()
    %c0_13 = arith.constant 0 : index
    %28 = arith.index_cast %12 : i32 to index
    %c0_14 = arith.constant 0 : index
    %29 = vector.load %arg7[%c0_13, %28, %c0_14] : memref<2x16x16xbf16, #tpu.memory_space<vmem>>, vector<2x16x16xbf16>
    tpu.vector_store %arg7[%c0_13, %28, %c0_14], %26 {strides = array<i32>} : memref<2x16x16xbf16, #tpu.memory_space<vmem>>, vector<2x16x16xbf16>,
    %30 = arith.truncf %27 : vector<2x16x32xf32> to vector<2x16x32xbf16>
    %c0_15 = arith.constant 0 : index
    %31 = arith.index_cast %12 : i32 to index
    %c0_16 = arith.constant 0 : index
    %32 = vector.load %arg9[%c0_15, %31, %c0_16] : memref<2x16x32xbf16, #tpu.memory_space<vmem>>, vector<2x16x32xbf16>
    tpu.vector_store %arg9[%c0_15, %31, %c0_16], %30 {strides = array<i32>} : memref<2x16x32xbf16, #tpu.memory_space<vmem>>, vector<2x16x32xbf16>,
    %c1_i32 = arith.constant 1 : i32
    %c0_17 = arith.constant 0 : index
    %c0_18 = arith.constant 0 : index
    %c0_19 = arith.constant 0 : index
    %33 = vector.load %arg9[%c0_17, %c0_18, %c0_19] : memref<2x16x32xbf16, #tpu.memory_space<vmem>>, vector<2x16x32xbf16>
    %34 = vector.shape_cast %33 : vector<2x16x32xbf16> to vector<32x32xbf16>
    %c0_20 = arith.constant 0 : index
    %c0_21 = arith.constant 0 : index
    %35 = vector.load %arg3[%c0_20, %c0_21] : memref<32x32xbf16, #tpu.memory_space<vmem>>, vector<32x32xbf16>
    %cst_22 = arith.constant dense<0.000000e+00> : vector<32x32xf32>
    %36 = tpu.matmul %34, %35, %cst_22 {dimension_numbers = #tpu.dot_dimension_numbers<[1], [0], [0], [1], [0, 0, 1, 1], [], []>} : vector<32x32xbf16>, vector<32x32xbf16>, vector<32x32xf32> -> vector<32x32xf32>
    %37 = vector.shape_cast %36 : vector<32x32xf32> to vector<2x16x32xf32>
    %38 = arith.addf %0, %37 : vector<2x16x32xf32>
    %c0_23 = arith.constant 0 : index
    %c12 = arith.constant 12 : index
    %c0_24 = arith.constant 0 : index
    %39 = vector.load %arg10[%c0_23, %c12, %c0_24] : memref<2x40x32xf32, #tpu.memory_space<vmem>>, vector<2x16x32xf32>
    tpu.vector_store %arg10[%c0_23, %c12, %c0_24], %38 {strides = array<i32>} : memref<2x40x32xf32, #tpu.memory_space<vmem>>, vector<2x16x32xf32>,
    %40 = vector.extract_strided_slice %38 {offsets = [0, 0, 0], sizes = [2, 1, 32], strides = [1, 1, 1]} : vector<2x16x32xf32> to vector<2x1x32xf32>
    %41 = vector.shape_cast %40 : vector<2x1x32xf32> to vector<2x1x32xf32>
    %42 = vector.broadcast %41 : vector<2x1x32xf32> to vector<2x12x32xf32>
    %c0_25 = arith.constant 0 : index
    %c0_26 = arith.constant 0 : index
    %c0_27 = arith.constant 0 : index
    %43 = vector.load %arg10[%c0_25, %c0_26, %c0_27] : memref<2x40x32xf32, #tpu.memory_space<vmem>>, vector<2x12x32xf32>
    tpu.vector_store %arg10[%c0_25, %c0_26, %c0_27], %42 {strides = array<i32>} : memref<2x40x32xf32, #tpu.memory_space<vmem>>, vector<2x12x32xf32>,
    %44 = vector.extract_strided_slice %38 {offsets = [0, 15, 0], sizes = [2, 1, 32], strides = [1, 1, 1]} : vector<2x16x32xf32> to vector<2x1x32xf32>
    %45 = vector.shape_cast %44 : vector<2x1x32xf32> to vector<2x1x32xf32>
    %46 = vector.broadcast %45 : vector<2x1x32xf32> to vector<2x12x32xf32>
    %c0_28 = arith.constant 0 : index
    %c28 = arith.constant 28 : index
    %c0_29 = arith.constant 0 : index
    %47 = vector.load %arg10[%c0_28, %c28, %c0_29] : memref<2x40x32xf32, #tpu.memory_space<vmem>>, vector<2x12x32xf32>
    tpu.vector_store %arg10[%c0_28, %c28, %c0_29], %46 {strides = array<i32>} : memref<2x40x32xf32, #tpu.memory_space<vmem>>, vector<2x12x32xf32>,
    %c0_30 = arith.constant 0 : index
    %c0_31 = arith.constant 0 : index
    %c0_32 = arith.constant 0 : index
    %48 = vector.load %arg10[%c0_30, %c0_31, %c0_32] : memref<2x40x32xf32, #tpu.memory_space<vmem>>, vector<2x16x32xf32>
    %c0_33 = arith.constant 0 : index
    %c1 = arith.constant 1 : index
    %c0_34 = arith.constant 0 : index
    %49 = vector.load %arg10[%c0_33, %c1, %c0_34] : memref<2x40x32xf32, #tpu.memory_space<vmem>>, vector<2x16x32xf32>
    %50 = arith.addf %48, %49 : vector<2x16x32xf32>
    %c0_35 = arith.constant 0 : index
    %c2 = arith.constant 2 : index
    %c0_36 = arith.constant 0 : index
    %51 = vector.load %arg10[%c0_35, %c2, %c0_36] : memref<2x40x32xf32, #tpu.memory_space<vmem>>, vector<2x16x32xf32>
    %52 = arith.addf %50, %51 : vector<2x16x32xf32>
    %c0_37 = arith.constant 0 : index
    %c3 = arith.constant 3 : index
    %c0_38 = arith.constant 0 : index
    %53 = vector.load %arg10[%c0_37, %c3, %c0_38] : memref<2x40x32xf32, #tpu.memory_space<vmem>>, vector<2x16x32xf32>
    %54 = arith.addf %52, %53 : vector<2x16x32xf32>
    %c0_39 = arith.constant 0 : index
    %c4 = arith.constant 4 : index
    %c0_40 = arith.constant 0 : index
    %55 = vector.load %arg10[%c0_39, %c4, %c0_40] : memref<2x40x32xf32, #tpu.memory_space<vmem>>, vector<2x16x32xf32>
    %56 = arith.addf %54, %55 : vector<2x16x32xf32>
    %c0_41 = arith.constant 0 : index
    %c5 = arith.constant 5 : index
    %c0_42 = arith.constant 0 : index
    %57 = vector.load %arg10[%c0_41, %c5, %c0_42] : memref<2x40x32xf32, #tpu.memory_space<vmem>>, vector<2x16x32xf32>
    %58 = arith.addf %56, %57 : vector<2x16x32xf32>
    %c0_43 = arith.constant 0 : index
    %c6 = arith.constant 6 : index
    %c0_44 = arith.constant 0 : index
    %59 = vector.load %arg10[%c0_43, %c6, %c0_44] : memref<2x40x32xf32, #tpu.memory_space<vmem>>, vector<2x16x32xf32>
    %60 = arith.addf %58, %59 : vector<2x16x32xf32>
    %c0_45 = arith.constant 0 : index
    %c7 = arith.constant 7 : index
    %c0_46 = arith.constant 0 : index
    %61 = vector.load %arg10[%c0_45, %c7, %c0_46] : memref<2x40x32xf32, #tpu.memory_space<vmem>>, vector<2x16x32xf32>
    %62 = arith.addf %60, %61 : vector<2x16x32xf32>
    %c0_47 = arith.constant 0 : index
    %c8 = arith.constant 8 : index
    %c0_48 = arith.constant 0 : index
    %63 = vector.load %arg10[%c0_47, %c8, %c0_48] : memref<2x40x32xf32, #tpu.memory_space<vmem>>, vector<2x16x32xf32>
    %64 = arith.addf %62, %63 : vector<2x16x32xf32>
    %c0_49 = arith.constant 0 : index
    %c9 = arith.constant 9 : index
    %c0_50 = arith.constant 0 : index
    %65 = vector.load %arg10[%c0_49, %c9, %c0_50] : memref<2x40x32xf32, #tpu.memory_space<vmem>>, vector<2x16x32xf32>
    %66 = arith.addf %64, %65 : vector<2x16x32xf32>
    %c0_51 = arith.constant 0 : index
    %c10 = arith.constant 10 : index
    %c0_52 = arith.constant 0 : index
    %67 = vector.load %arg10[%c0_51, %c10, %c0_52] : memref<2x40x32xf32, #tpu.memory_space<vmem>>, vector<2x16x32xf32>
    %68 = arith.addf %66, %67 : vector<2x16x32xf32>
    %c0_53 = arith.constant 0 : index
    %c11 = arith.constant 11 : index
    %c0_54 = arith.constant 0 : index
    %69 = vector.load %arg10[%c0_53, %c11, %c0_54] : memref<2x40x32xf32, #tpu.memory_space<vmem>>, vector<2x16x32xf32>
    %70 = arith.addf %68, %69 : vector<2x16x32xf32>
    %c0_55 = arith.constant 0 : index
    %c12_56 = arith.constant 12 : index
    %c0_57 = arith.constant 0 : index
    %71 = vector.load %arg10[%c0_55, %c12_56, %c0_57] : memref<2x40x32xf32, #tpu.memory_space<vmem>>, vector<2x16x32xf32>
    %72 = arith.addf %70, %71 : vector<2x16x32xf32>
    %c0_58 = arith.constant 0 : index
    %c13 = arith.constant 13 : index
    %c0_59 = arith.constant 0 : index
    %73 = vector.load %arg10[%c0_58, %c13, %c0_59] : memref<2x40x32xf32, #tpu.memory_space<vmem>>, vector<2x16x32xf32>
    %74 = arith.addf %72, %73 : vector<2x16x32xf32>
    %c0_60 = arith.constant 0 : index
    %c14 = arith.constant 14 : index
    %c0_61 = arith.constant 0 : index
    %75 = vector.load %arg10[%c0_60, %c14, %c0_61] : memref<2x40x32xf32, #tpu.memory_space<vmem>>, vector<2x16x32xf32>
    %76 = arith.addf %74, %75 : vector<2x16x32xf32>
    %c0_62 = arith.constant 0 : index
    %c15 = arith.constant 15 : index
    %c0_63 = arith.constant 0 : index
    %77 = vector.load %arg10[%c0_62, %c15, %c0_63] : memref<2x40x32xf32, #tpu.memory_space<vmem>>, vector<2x16x32xf32>
    %78 = arith.addf %76, %77 : vector<2x16x32xf32>
    %c0_64 = arith.constant 0 : index
    %c16 = arith.constant 16 : index
    %c0_65 = arith.constant 0 : index
    %79 = vector.load %arg10[%c0_64, %c16, %c0_65] : memref<2x40x32xf32, #tpu.memory_space<vmem>>, vector<2x16x32xf32>
    %80 = arith.addf %78, %79 : vector<2x16x32xf32>
    %c0_66 = arith.constant 0 : index
    %c17 = arith.constant 17 : index
    %c0_67 = arith.constant 0 : index
    %81 = vector.load %arg10[%c0_66, %c17, %c0_67] : memref<2x40x32xf32, #tpu.memory_space<vmem>>, vector<2x16x32xf32>
    %82 = arith.addf %80, %81 : vector<2x16x32xf32>
    %c0_68 = arith.constant 0 : index
    %c18 = arith.constant 18 : index
    %c0_69 = arith.constant 0 : index
    %83 = vector.load %arg10[%c0_68, %c18, %c0_69] : memref<2x40x32xf32, #tpu.memory_space<vmem>>, vector<2x16x32xf32>
    %84 = arith.addf %82, %83 : vector<2x16x32xf32>
    %c0_70 = arith.constant 0 : index
    %c19 = arith.constant 19 : index
    %c0_71 = arith.constant 0 : index
    %85 = vector.load %arg10[%c0_70, %c19, %c0_71] : memref<2x40x32xf32, #tpu.memory_space<vmem>>, vector<2x16x32xf32>
    %86 = arith.addf %84, %85 : vector<2x16x32xf32>
    %c0_72 = arith.constant 0 : index
    %c20 = arith.constant 20 : index
    %c0_73 = arith.constant 0 : index
    %87 = vector.load %arg10[%c0_72, %c20, %c0_73] : memref<2x40x32xf32, #tpu.memory_space<vmem>>, vector<2x16x32xf32>
    %88 = arith.addf %86, %87 : vector<2x16x32xf32>
    %c0_74 = arith.constant 0 : index
    %c21 = arith.constant 21 : index
    %c0_75 = arith.constant 0 : index
    %89 = vector.load %arg10[%c0_74, %c21, %c0_75] : memref<2x40x32xf32, #tpu.memory_space<vmem>>, vector<2x16x32xf32>
    %90 = arith.addf %88, %89 : vector<2x16x32xf32>
    %c0_76 = arith.constant 0 : index
    %c22 = arith.constant 22 : index
    %c0_77 = arith.constant 0 : index
    %91 = vector.load %arg10[%c0_76, %c22, %c0_77] : memref<2x40x32xf32, #tpu.memory_space<vmem>>, vector<2x16x32xf32>
    %92 = arith.addf %90, %91 : vector<2x16x32xf32>
    %c0_78 = arith.constant 0 : index
    %c23 = arith.constant 23 : index
    %c0_79 = arith.constant 0 : index
    %93 = vector.load %arg10[%c0_78, %c23, %c0_79] : memref<2x40x32xf32, #tpu.memory_space<vmem>>, vector<2x16x32xf32>
    %94 = arith.addf %92, %93 : vector<2x16x32xf32>
    %c0_80 = arith.constant 0 : index
    %c24 = arith.constant 24 : index
    %c0_81 = arith.constant 0 : index
    %95 = vector.load %arg10[%c0_80, %c24, %c0_81] : memref<2x40x32xf32, #tpu.memory_space<vmem>>, vector<2x16x32xf32>
    %96 = arith.addf %94, %95 : vector<2x16x32xf32>
    %cst_82 = arith.constant 4.000000e-02 : f32
    %97 = vector.broadcast %cst_82 : f32 to vector<2x16x32xf32>
    %98 = arith.mulf %96, %97 : vector<2x16x32xf32>
    %99 = arith.subf %38, %98 : vector<2x16x32xf32>
    %100 = vector.shape_cast %99 : vector<2x16x32xf32> to vector<32x32xf32>
    %101 = arith.truncf %100 : vector<32x32xf32> to vector<32x32xbf16>
    %c0_83 = arith.constant 0 : index
    %c0_84 = arith.constant 0 : index
    %102 = vector.load %arg4[%c0_83, %c0_84] : memref<32x128xbf16, #tpu.memory_space<vmem>>, vector<32x128xbf16>
    %cst_85 = arith.constant dense<0.000000e+00> : vector<32x128xf32>
    %103 = tpu.matmul %101, %102, %cst_85 {dimension_numbers = #tpu.dot_dimension_numbers<[1], [0], [0], [1], [0, 0, 1, 1], [], []>} : vector<32x32xbf16>, vector<32x128xbf16>, vector<32x128xf32> -> vector<32x128xf32>
    %cst_86 = arith.constant 0.000000e+00 : f32
    %104 = vector.broadcast %cst_86 : f32 to vector<32x128xf32>
    %105 = arith.maximumf %103, %104 : vector<32x128xf32>
    %106 = arith.truncf %105 : vector<32x128xf32> to vector<32x128xbf16>
    %c0_87 = arith.constant 0 : index
    %c0_88 = arith.constant 0 : index
    %107 = vector.load %arg5[%c0_87, %c0_88] : memref<128x32xbf16, #tpu.memory_space<vmem>>, vector<128x32xbf16>
    %cst_89 = arith.constant dense<0.000000e+00> : vector<32x32xf32>
    %108 = tpu.matmul %106, %107, %cst_89 {dimension_numbers = #tpu.dot_dimension_numbers<[1], [0], [0], [1], [0, 0, 1, 1], [], []>} : vector<32x128xbf16>, vector<128x32xbf16>, vector<32x32xf32> -> vector<32x32xf32>
    %109 = vector.shape_cast %108 : vector<32x32xf32> to vector<2x16x32xf32>
    %110 = arith.addf %99, %109 : vector<2x16x32xf32>
    %c0_90 = arith.constant 0 : index
    %c12_91 = arith.constant 12 : index
    %c0_92 = arith.constant 0 : index
    %111 = vector.load %arg10[%c0_90, %c12_91, %c0_92] : memref<2x40x32xf32, #tpu.memory_space<vmem>>, vector<2x16x32xf32>
    tpu.vector_store %arg10[%c0_90, %c12_91, %c0_92], %110 {strides = array<i32>} : memref<2x40x32xf32, #tpu.memory_space<vmem>>, vector<2x16x32xf32>,
    %112 = vector.extract_strided_slice %110 {offsets = [0, 0, 0], sizes = [2, 1, 32], strides = [1, 1, 1]} : vector<2x16x32xf32> to vector<2x1x32xf32>
    %113 = vector.shape_cast %112 : vector<2x1x32xf32> to vector<2x1x32xf32>
    %114 = vector.broadcast %113 : vector<2x1x32xf32> to vector<2x12x32xf32>
    %c0_93 = arith.constant 0 : index
    %c0_94 = arith.constant 0 : index
    %c0_95 = arith.constant 0 : index
    %115 = vector.load %arg10[%c0_93, %c0_94, %c0_95] : memref<2x40x32xf32, #tpu.memory_space<vmem>>, vector<2x12x32xf32>
    tpu.vector_store %arg10[%c0_93, %c0_94, %c0_95], %114 {strides = array<i32>} : memref<2x40x32xf32, #tpu.memory_space<vmem>>, vector<2x12x32xf32>,
    %116 = vector.extract_strided_slice %110 {offsets = [0, 15, 0], sizes = [2, 1, 32], strides = [1, 1, 1]} : vector<2x16x32xf32> to vector<2x1x32xf32>
    %117 = vector.shape_cast %116 : vector<2x1x32xf32> to vector<2x1x32xf32>
    %118 = vector.broadcast %117 : vector<2x1x32xf32> to vector<2x12x32xf32>
    %c0_96 = arith.constant 0 : index
    %c28_97 = arith.constant 28 : index
    %c0_98 = arith.constant 0 : index
    %119 = vector.load %arg10[%c0_96, %c28_97, %c0_98] : memref<2x40x32xf32, #tpu.memory_space<vmem>>, vector<2x12x32xf32>
    tpu.vector_store %arg10[%c0_96, %c28_97, %c0_98], %118 {strides = array<i32>} : memref<2x40x32xf32, #tpu.memory_space<vmem>>, vector<2x12x32xf32>,
    %c0_99 = arith.constant 0 : index
    %c0_100 = arith.constant 0 : index
    %c0_101 = arith.constant 0 : index
    %120 = vector.load %arg10[%c0_99, %c0_100, %c0_101] : memref<2x40x32xf32, #tpu.memory_space<vmem>>, vector<2x16x32xf32>
    %c0_102 = arith.constant 0 : index
    %c1_103 = arith.constant 1 : index
    %c0_104 = arith.constant 0 : index
    %121 = vector.load %arg10[%c0_102, %c1_103, %c0_104] : memref<2x40x32xf32, #tpu.memory_space<vmem>>, vector<2x16x32xf32>
    %122 = arith.addf %120, %121 : vector<2x16x32xf32>
    %c0_105 = arith.constant 0 : index
    %c2_106 = arith.constant 2 : index
    %c0_107 = arith.constant 0 : index
    %123 = vector.load %arg10[%c0_105, %c2_106, %c0_107] : memref<2x40x32xf32, #tpu.memory_space<vmem>>, vector<2x16x32xf32>
    %124 = arith.addf %122, %123 : vector<2x16x32xf32>
    %c0_108 = arith.constant 0 : index
    %c3_109 = arith.constant 3 : index
    %c0_110 = arith.constant 0 : index
    %125 = vector.load %arg10[%c0_108, %c3_109, %c0_110] : memref<2x40x32xf32, #tpu.memory_space<vmem>>, vector<2x16x32xf32>
    %126 = arith.addf %124, %125 : vector<2x16x32xf32>
    %c0_111 = arith.constant 0 : index
    %c4_112 = arith.constant 4 : index
    %c0_113 = arith.constant 0 : index
    %127 = vector.load %arg10[%c0_111, %c4_112, %c0_113] : memref<2x40x32xf32, #tpu.memory_space<vmem>>, vector<2x16x32xf32>
    %128 = arith.addf %126, %127 : vector<2x16x32xf32>
    %c0_114 = arith.constant 0 : index
    %c5_115 = arith.constant 5 : index
    %c0_116 = arith.constant 0 : index
    %129 = vector.load %arg10[%c0_114, %c5_115, %c0_116] : memref<2x40x32xf32, #tpu.memory_space<vmem>>, vector<2x16x32xf32>
    %130 = arith.addf %128, %129 : vector<2x16x32xf32>
    %c0_117 = arith.constant 0 : index
    %c6_118 = arith.constant 6 : index
    %c0_119 = arith.constant 0 : index
    %131 = vector.load %arg10[%c0_117, %c6_118, %c0_119] : memref<2x40x32xf32, #tpu.memory_space<vmem>>, vector<2x16x32xf32>
    %132 = arith.addf %130, %131 : vector<2x16x32xf32>
    %c0_120 = arith.constant 0 : index
    %c7_121 = arith.constant 7 : index
    %c0_122 = arith.constant 0 : index
    %133 = vector.load %arg10[%c0_120, %c7_121, %c0_122] : memref<2x40x32xf32, #tpu.memory_space<vmem>>, vector<2x16x32xf32>
    %134 = arith.addf %132, %133 : vector<2x16x32xf32>
    %c0_123 = arith.constant 0 : index
    %c8_124 = arith.constant 8 : index
    %c0_125 = arith.constant 0 : index
    %135 = vector.load %arg10[%c0_123, %c8_124, %c0_125] : memref<2x40x32xf32, #tpu.memory_space<vmem>>, vector<2x16x32xf32>
    %136 = arith.addf %134, %135 : vector<2x16x32xf32>
    %c0_126 = arith.constant 0 : index
    %c9_127 = arith.constant 9 : index
    %c0_128 = arith.constant 0 : index
    %137 = vector.load %arg10[%c0_126, %c9_127, %c0_128] : memref<2x40x32xf32, #tpu.memory_space<vmem>>, vector<2x16x32xf32>
    %138 = arith.addf %136, %137 : vector<2x16x32xf32>
    %c0_129 = arith.constant 0 : index
    %c10_130 = arith.constant 10 : index
    %c0_131 = arith.constant 0 : index
    %139 = vector.load %arg10[%c0_129, %c10_130, %c0_131] : memref<2x40x32xf32, #tpu.memory_space<vmem>>, vector<2x16x32xf32>
    %140 = arith.addf %138, %139 : vector<2x16x32xf32>
    %c0_132 = arith.constant 0 : index
    %c11_133 = arith.constant 11 : index
    %c0_134 = arith.constant 0 : index
    %141 = vector.load %arg10[%c0_132, %c11_133, %c0_134] : memref<2x40x32xf32, #tpu.memory_space<vmem>>, vector<2x16x32xf32>
    %142 = arith.addf %140, %141 : vector<2x16x32xf32>
    %c0_135 = arith.constant 0 : index
    %c12_136 = arith.constant 12 : index
    %c0_137 = arith.constant 0 : index
    %143 = vector.load %arg10[%c0_135, %c12_136, %c0_137] : memref<2x40x32xf32, #tpu.memory_space<vmem>>, vector<2x16x32xf32>
    %144 = arith.addf %142, %143 : vector<2x16x32xf32>
    %c0_138 = arith.constant 0 : index
    %c13_139 = arith.constant 13 : index
    %c0_140 = arith.constant 0 : index
    %145 = vector.load %arg10[%c0_138, %c13_139, %c0_140] : memref<2x40x32xf32, #tpu.memory_space<vmem>>, vector<2x16x32xf32>
    %146 = arith.addf %144, %145 : vector<2x16x32xf32>
    %c0_141 = arith.constant 0 : index
    %c14_142 = arith.constant 14 : index
    %c0_143 = arith.constant 0 : index
    %147 = vector.load %arg10[%c0_141, %c14_142, %c0_143] : memref<2x40x32xf32, #tpu.memory_space<vmem>>, vector<2x16x32xf32>
    %148 = arith.addf %146, %147 : vector<2x16x32xf32>
    %c0_144 = arith.constant 0 : index
    %c15_145 = arith.constant 15 : index
    %c0_146 = arith.constant 0 : index
    %149 = vector.load %arg10[%c0_144, %c15_145, %c0_146] : memref<2x40x32xf32, #tpu.memory_space<vmem>>, vector<2x16x32xf32>
    %150 = arith.addf %148, %149 : vector<2x16x32xf32>
    %c0_147 = arith.constant 0 : index
    %c16_148 = arith.constant 16 : index
    %c0_149 = arith.constant 0 : index
    %151 = vector.load %arg10[%c0_147, %c16_148, %c0_149] : memref<2x40x32xf32, #tpu.memory_space<vmem>>, vector<2x16x32xf32>
    %152 = arith.addf %150, %151 : vector<2x16x32xf32>
    %c0_150 = arith.constant 0 : index
    %c17_151 = arith.constant 17 : index
    %c0_152 = arith.constant 0 : index
    %153 = vector.load %arg10[%c0_150, %c17_151, %c0_152] : memref<2x40x32xf32, #tpu.memory_space<vmem>>, vector<2x16x32xf32>
    %154 = arith.addf %152, %153 : vector<2x16x32xf32>
    %c0_153 = arith.constant 0 : index
    %c18_154 = arith.constant 18 : index
    %c0_155 = arith.constant 0 : index
    %155 = vector.load %arg10[%c0_153, %c18_154, %c0_155] : memref<2x40x32xf32, #tpu.memory_space<vmem>>, vector<2x16x32xf32>
    %156 = arith.addf %154, %155 : vector<2x16x32xf32>
    %c0_156 = arith.constant 0 : index
    %c19_157 = arith.constant 19 : index
    %c0_158 = arith.constant 0 : index
    %157 = vector.load %arg10[%c0_156, %c19_157, %c0_158] : memref<2x40x32xf32, #tpu.memory_space<vmem>>, vector<2x16x32xf32>
    %158 = arith.addf %156, %157 : vector<2x16x32xf32>
    %c0_159 = arith.constant 0 : index
    %c20_160 = arith.constant 20 : index
    %c0_161 = arith.constant 0 : index
    %159 = vector.load %arg10[%c0_159, %c20_160, %c0_161] : memref<2x40x32xf32, #tpu.memory_space<vmem>>, vector<2x16x32xf32>
    %160 = arith.addf %158, %159 : vector<2x16x32xf32>
    %c0_162 = arith.constant 0 : index
    %c21_163 = arith.constant 21 : index
    %c0_164 = arith.constant 0 : index
    %161 = vector.load %arg10[%c0_162, %c21_163, %c0_164] : memref<2x40x32xf32, #tpu.memory_space<vmem>>, vector<2x16x32xf32>
    %162 = arith.addf %160, %161 : vector<2x16x32xf32>
    %c0_165 = arith.constant 0 : index
    %c22_166 = arith.constant 22 : index
    %c0_167 = arith.constant 0 : index
    %163 = vector.load %arg10[%c0_165, %c22_166, %c0_167] : memref<2x40x32xf32, #tpu.memory_space<vmem>>, vector<2x16x32xf32>
    %164 = arith.addf %162, %163 : vector<2x16x32xf32>
    %c0_168 = arith.constant 0 : index
    %c23_169 = arith.constant 23 : index
    %c0_170 = arith.constant 0 : index
    %165 = vector.load %arg10[%c0_168, %c23_169, %c0_170] : memref<2x40x32xf32, #tpu.memory_space<vmem>>, vector<2x16x32xf32>
    %166 = arith.addf %164, %165 : vector<2x16x32xf32>
    %c0_171 = arith.constant 0 : index
    %c24_172 = arith.constant 24 : index
    %c0_173 = arith.constant 0 : index
    %167 = vector.load %arg10[%c0_171, %c24_172, %c0_173] : memref<2x40x32xf32, #tpu.memory_space<vmem>>, vector<2x16x32xf32>
    %168 = arith.addf %166, %167 : vector<2x16x32xf32>
    %cst_174 = arith.constant 4.000000e-02 : f32
    %169 = vector.broadcast %cst_174 : f32 to vector<2x16x32xf32>
    %170 = arith.mulf %168, %169 : vector<2x16x32xf32>
    %171 = arith.subf %110, %170 : vector<2x16x32xf32>
    %c0_175 = arith.constant 0 : index
    %c0_176 = arith.constant 0 : index
    %c0_177 = arith.constant 0 : index
    %172 = vector.load %arg6[%c0_175, %c0_176, %c0_177] : memref<2x16x32xf32, #tpu.memory_space<vmem>>, vector<2x16x32xf32>
    tpu.vector_store %arg6[%c0_175, %c0_176, %c0_177], %171 {strides = array<i32>} : memref<2x16x32xf32, #tpu.memory_space<vmem>>, vector<2x16x32xf32>,
    return
  }
  func.func @transform_0(%arg0: i32) -> (i32, i32, i32) {
    %c0_i32 = arith.constant 0 : i32
    %c0_i32_0 = arith.constant 0 : i32
    %c0_i32_1 = arith.constant 0 : i32
    return %arg0, %c0_i32, %c0_i32_0 : i32, i32, i32
  }
  func.func @transform_1(%arg0: i32) -> (i32, i32) {
    %c0_i32 = arith.constant 0 : i32
    %c0_i32_0 = arith.constant 0 : i32
    %c0_i32_1 = arith.constant 0 : i32
    return %c0_i32, %c0_i32_0 : i32, i32
  }
  func.func @transform_2(%arg0: i32) -> (i32, i32) {
    %c0_i32 = arith.constant 0 : i32
    %c0_i32_0 = arith.constant 0 : i32
    %c0_i32_1 = arith.constant 0 : i32
    return %c0_i32, %c0_i32_0 : i32, i32
  }
  func.func @transform_3(%arg0: i32) -> (i32, i32) {
    %c0_i32 = arith.constant 0 : i32
    %c0_i32_0 = arith.constant 0 : i32
    %c0_i32_1 = arith.constant 0 : i32
    return %c0_i32, %c0_i32_0 : i32, i32
  }
  func.func @transform_4(%arg0: i32) -> (i32, i32) {
    %c0_i32 = arith.constant 0 : i32
    %c0_i32_0 = arith.constant 0 : i32
    %c0_i32_1 = arith.constant 0 : i32
    return %c0_i32, %c0_i32_0 : i32, i32
  }
  func.func @transform_5(%arg0: i32) -> (i32, i32, i32) {
    %c0_i32 = arith.constant 0 : i32
    %c0_i32_0 = arith.constant 0 : i32
    %c0_i32_1 = arith.constant 0 : i32
    return %arg0, %c0_i32, %c0_i32_0 : i32, i32, i32
  }
  func.func @transform_6(%arg0: i32) -> (i32, i32, i32) {
    %c0_i32 = arith.constant 0 : i32
    %c0_i32_0 = arith.constant 0 : i32
    %c0_i32_1 = arith.constant 0 : i32
    return %arg0, %c0_i32, %c0_i32_0 : i32, i32, i32
  }
}

</mosaic_0001>

<bundles_post_ra>
// kernel: tpu_custom_call.1
= control target key start
LH: loop header
LB: loop body
LE: loop exit
PB: predicated region body
PF: predicated region fallthrough
CT: control target
= control target key end

     0   :  { %12 = vsyncpa [#allocation6], 0  ;;  %s1905_s0 = inlined_call_operand.hbm [shape: f32[2,16,32], index: 0, kind: input, shape index: {}]   ;;  %s1906_s1 = inlined_call_operand.hbm [shape: bf16[32,96], index: 1, kind: input, shape index: {}]   ;;  %s1907_s2 = inlined_call_operand.hbm [shape: bf16[32,32], index: 2, kind: input, shape index: {}]   ;;  %s1908_s3 = inlined_call_operand.hbm [shape: bf16[32,128], index: 3, kind: input, shape index: {}]   ;;  %s1909_s4 = inlined_call_operand.hbm [shape: bf16[128,32], index: 4, kind: input, shape index: {}]   ;;  %s1910_s5 = inlined_call_operand.hbm [shape: f32[2,16,32], index: 5, kind: output, shape index: {0}]   ;;  %s1911_s6 = inlined_call_operand.hbm [shape: bf16[2,16,16], index: 6, kind: output, shape index: {1}]  }
   0x1   :  { %13 = vsyncpa [#allocation9], 0 }
   0x2   :  { %14 = vsyncpa [#allocation12], 0 }
   0x3   :  { %15 = vsyncpa [#allocation7], 0 }
   0x4   :  { %16 = vsyncpa [#allocation16], 0  ;;  %s1488_s21 = smov [#allocation8]   ;;  %s1324_s25 = scalar_lea.hbm %s1906_s1, 256 }
   0x5   :  { %s34_s22 = sshll.u32 %s1488_s21, 4  ;;  %p1325_p0 = scmp.ne.s32.totalorder %s1906_s1, %s1324_s25  ;;  %s35_s22 = int_to_ptr.vmem [resolvable:$true] %s34_s22 }
   0x6   :  { %p1328_p1 = scmp.lt.u32.totalorder %s1324_s25, %s1906_s1 }
   0x8   :  { %p1330_p2 = pnand %p1328_p1, %p1325_p0 }
   0xa   :  { %1333 = shalt.err (!%p1330_p2)
}
   0xb   :  { %s1334_s30 = scalar_lea.vmem %s35_s22, 256  ;;  %p1339_p4 = scmp.lt.s32.totalorder %s35_s22, %s35_s22 }
   0xc   :  { %p1335_p3 = scmp.ne.s32.totalorder %s35_s22, %s1334_s30  ;;  %p1340_p5 = scmp.lt.s32.totalorder %s1334_s30, %s1334_s30 }
   0xe   :  { %p1341_p6 = por %p1340_p5, %p1339_p4 }
  0x10   :  { %p1342_p7 = pnand %p1341_p6, %p1335_p3 }
  0x12   :  { %1345 = shalt.err (!%p1342_p7)
}
  0x13   :  { %s1489_s7 = smov 64   ;;  %s1490_s8 = smov 4  }
  0x14   :  { %40 = dma.hbm_to_vmem [thread:$0]  %s1906_s1, 256, %s35_s22, [#allocation9], %s1489_s7, %s1489_s7, %s1490_s8  }
  0x15   :  { %s1491_s11 = smov [#allocation11]   ;;  %s1492_s13 = smov [#allocation5]  }
  0x16   :  { %s58_s12 = sshll.u32 %s1491_s11, 4  ;;  %s22_s14 = sshll.u32 %s1492_s13, 4  ;;  %s59_s12 = int_to_ptr.vmem [resolvable:$true] %s58_s12  ;;  %s23_s14 = int_to_ptr.vmem [resolvable:$true] %s22_s14 }
  0x17   :  { %s1346_s17 = scalar_lea.hbm %s1908_s3, 256 }
  0x18   :  { %p1347_p8 = scmp.ne.s32.totalorder %s1908_s3, %s1346_s17  ;;  %p1350_p9 = scmp.lt.u32.totalorder %s1346_s17, %s1908_s3 }
  0x1a   :  { %p1352_p10 = pnand %p1350_p9, %p1347_p8 }
  0x1c   :  { %1355 = shalt.err (!%p1352_p10)
}
  0x1d   :  { %s1356_s1 = scalar_lea.vmem %s59_s12, 256  ;;  %p1361_p12 = scmp.lt.s32.totalorder %s59_s12, %s59_s12 }
  0x1e   :  { %p1357_p11 = scmp.ne.s32.totalorder %s59_s12, %s1356_s1  ;;  %p1362_p13 = scmp.lt.s32.totalorder %s1356_s1, %s1356_s1 }
  0x20   :  { %p1363_p0 = por %p1362_p13, %p1361_p12 }
  0x22   :  { %p1364_p1 = pnand %p1363_p0, %p1357_p11 }
  0x24   :  { %1367 = shalt.err (!%p1364_p1)
}
  0x25   :  { %64 = dma.hbm_to_vmem [thread:$0]  %s1908_s3, 256, %s59_s12, [#allocation12], %s1489_s7, %s1489_s7, %s1490_s8  }
  0x26   :  { %s1368_s26 = scalar_lea.hbm %s1905_s0, 512 }
  0x27   :  { %p1369_p2 = scmp.ne.s32.totalorder %s1905_s0, %s1368_s26  ;;  %p1372_p3 = scmp.lt.u32.totalorder %s1368_s26, %s1905_s0 }
  0x29   :  { %p1374_p4 = pnand %p1372_p3, %p1369_p2 }
  0x2b   :  { %1377 = shalt.err (!%p1374_p4)
}
  0x2c   :  { %s1378_s9 = scalar_lea.vmem %s23_s14, 512  ;;  %p1383_p6 = scmp.lt.s32.totalorder %s23_s14, %s23_s14 }
  0x2d   :  { %p1379_p5 = scmp.ne.s32.totalorder %s23_s14, %s1378_s9  ;;  %p1384_p7 = scmp.lt.s32.totalorder %s1378_s9, %s1378_s9 }
  0x2f   :  { %p1385_p8 = por %p1384_p7, %p1383_p6 }
  0x31   :  { %p1386_p9 = pnand %p1385_p8, %p1379_p5 }
  0x33   :  { %1389 = shalt.err (!%p1386_p9)
}
  0x34   :  { %s1493_s3 = smov 128   ;;  %s1494_s10 = smov 8  }
  0x35   :  { %28 = dma.hbm_to_vmem [thread:$0]  %s1905_s0, 512, %s23_s14, [#allocation6], %s1493_s3, %s1493_s3, %s1494_s10  }
  0x36   :  { %s1495_s13 = smov [#allocation10]   ;;  %s1496_s16 = smov [#allocation13]  }
  0x37   :  { %s46_s15 = sshll.u32 %s1495_s13, 4  ;;  %s70_s17 = sshll.u32 %s1496_s16, 4  ;;  %s47_s15 = int_to_ptr.vmem [resolvable:$true] %s46_s15  ;;  %s71_s17 = int_to_ptr.vmem [resolvable:$true] %s70_s17 }
  0x38   :  { %s1390_s20 = scalar_lea.hbm %s1907_s2, 256 }
  0x39   :  { %p1391_p10 = scmp.ne.s32.totalorder %s1907_s2, %s1390_s20  ;;  %p1394_p11 = scmp.lt.u32.totalorder %s1390_s20, %s1907_s2 }
  0x3b   :  { %p1396_p12 = pnand %p1394_p11, %p1391_p10 }
  0x3d   :  { %1399 = shalt.err (!%p1396_p12)
}
  0x3e   :  { %s1400_s0 = scalar_lea.vmem %s47_s15, 256  ;;  %p1405_p0 = scmp.lt.s32.totalorder %s47_s15, %s47_s15 }
  0x3f   :  { %p1401_p13 = scmp.ne.s32.totalorder %s47_s15, %s1400_s0  ;;  %p1406_p1 = scmp.lt.s32.totalorder %s1400_s0, %s1400_s0 }
  0x41   :  { %p1407_p2 = por %p1406_p1, %p1405_p0 }
  0x43   :  { %p1408_p3 = pnand %p1407_p2, %p1401_p13 }
  0x45   :  { %1411 = shalt.err (!%p1408_p3)
}
  0x46   :  { %52 = dma.hbm_to_vmem [thread:$0]  %s1907_s2, 256, %s47_s15, [#allocation9], %s1489_s7, %s1489_s7, %s1490_s8  }
  0x47   :  { %s1412_s27 = scalar_lea.hbm %s1909_s4, 1024 }
  0x48   :  { %p1413_p4 = scmp.ne.s32.totalorder %s1909_s4, %s1412_s27  ;;  %p1416_p5 = scmp.lt.u32.totalorder %s1412_s27, %s1909_s4 }
  0x4a   :  { %p1418_p6 = pnand %p1416_p5, %p1413_p4 }
  0x4c   :  { %1421 = shalt.err (!%p1418_p6)
}
  0x4d   :  { %s1422_s11 = scalar_lea.vmem %s71_s17, 1024  ;;  %p1427_p8 = scmp.lt.s32.totalorder %s71_s17, %s71_s17 }
  0x4e   :  { %p1423_p7 = scmp.ne.s32.totalorder %s71_s17, %s1422_s11  ;;  %p1428_p9 = scmp.lt.s32.totalorder %s1422_s11, %s1422_s11 }
  0x50   :  { %p1429_p10 = por %p1428_p9, %p1427_p8 }
  0x52   :  { %p1430_p11 = pnand %p1429_p10, %p1423_p7 }
  0x54   :  { %1433 = shalt.err (!%p1430_p11)
}
  0x55   :  { %76 = dma.hbm_to_vmem [thread:$0]  %s1909_s4, 1024, %s71_s17, [#allocation12], %s1489_s7, %s1489_s7, %s1490_s8  }
  0x56   :  { %1478 = dma.done.wait [#allocation6], 512  }
  0x57   :  { %1479 = vsyncadd [#allocation6], 4294966784 }
  0x58   :  { %1480 = dma.done.wait [#allocation9], 512  }
  0x59   :  { %1481 = vsyncadd [#allocation9], 4294966784 }
  0x5a   :  { %1482 = dma.done.wait [#allocation12], 1280  }
  0x5b   :  { %1483 = vsyncadd [#allocation12], 4294966016  ;;  %v1294_v0 = vld [vmem:[#allocation8] sm:$0xff]   ;;  %v1295_v1 = vld [vmem:[#allocation8 + $0x8] sm:$0xff]   ;;  %vm115_vm0 = vcmask 261120   ;;  %v1497_v8 = vmov 0.0  }
  0x5c   :  { %1212 = vmatprep.subr.bf16.mxu0 %v1294_v0  ;;  %v1612_v2 = vld [vmem:[#allocation5] sm:$0xff]  ;;  %v1614_v3 = vld [vmem:[#allocation5 + $0x8] sm:$0xff]  ;;  %v1616_v4 = vld [vmem:[#allocation5 + $0x10] sm:$0xff]  ;;  %1232 = vmatprep.subr.bf16.mxu1 %v1497_v8  ;;  %vm1498_vm1 = vmmov 0   ;;  %s1499_s4 = smov 96   ;;  %vm277_vm2 = vcmask 130048  }
  0x5d   :  { %1213 = vmatpush3.bf16.msra.mxu0 %v1294_v0  ;;  %v97_v5 = vpack.c.bf16 %v1614_v3, %v1612_v2  ;;  %v1620_v6 = vld [vmem:[#allocation5 + $0x18] sm:$0xff]  ;;  %1234 = vmatprep.mubr.msk.bf16.mxu1 %vm1498_vm1, %v1497_v8  ;;  %vm432_vm3 = vcmask 125952   ;;  %vm531_vm4 = vcmask 257024   ;;  %s1500_s13 = smov [#allocation15]  }
  0x5e   :  { %1214 = vmatprep.subr.bf16.mxu0 %v1295_v1  ;;  %v98_v7 = vpack.c.bf16 %v1620_v6, %v1616_v4  ;;  %s1132_s15 = sshll.u32 %s1500_s13, 4  ;;  %s1133_s15 = int_to_ptr.vmem [resolvable:$true] %s1132_s15 }
  0x5f   :  { %1216 = vmatprep.mubr.msk.bf16.mxu0 %vm115_vm0, %v97_v5  ;;  %s1434_s16 = scalar_lea.vmem %s1133_s15, 256  ;;  %p1439_p13 = scmp.lt.s32.totalorder %s1133_s15, %s1133_s15 }
  0x60   :  { %p1435_p12 = scmp.ne.s32.totalorder %s1133_s15, %s1434_s16  ;;  %p1440_p0 = scmp.lt.s32.totalorder %s1434_s16, %s1434_s16 }
  0x61   :  { %1215 = vmatpush3.bf16.msra.mxu0 %v1295_v1 }
  0x62   :  { %1220 = vmatprep.subr.bf16.mxu0 %v1497_v8  ;;  %p1441_p1 = por %p1440_p0, %p1439_p13 }
  0x64   :  { %1217 = vmatmul.mubr.msk.bf16.vlgmr.msra.gmra.mrb[0].mxu0 %vm115_vm0, %v98_v7  ;;  %p1442_p2 = pnand %p1441_p1, %p1435_p12 }
  0x65   :  { %1222 = vmatprep.mubr.msk.bf16.mxu0 %vm1498_vm1, %v1497_v8 }
 0x137   :  { %v1218_v9 = vpop.f32.mrb[0].mxu0 }
 0x138   :  { %v156_v10 = vpop.f32.mrb[1].mxu0 }
 0x139   :  { %v1219_v11 = vpop.f32.mrb[2].mxu0 }
 0x13a   :  { %v172_v12 = vpack.c.bf16 %v1219_v11, %v1218_v9  ;;  %v159_v13 = vpop.f32.mrb[3].mxu0 }
 0x13b   :  { %v1628_v14 = vpack.c.bf16 %v159_v13, %v156_v10  ;;  %v1296_v13 = vld [vmem:[#allocation10] sm:$0xff]  }
 0x13c   :  { %174 = vst.msk [vmem:[#allocation2 + $0x8] sm:$0xff] %vm115_vm0, %v172_v12 }
 0x13d   :  { %173 = vst.msk [vmem:[#allocation2] sm:$0xff] %vm115_vm0, %v1628_v14  ;;  %178 = vrot.lane.b32.xlu0 %v1628_v14, %s1499_s4 }
 0x141   :  { %228 = vrot.lane.b32.xlu0 %v172_v12, %s1499_s4 }
 0x143   :  { %v176_v20 = vld [vmem:[#allocation2 + $0x8] sm:$0xff] }
 0x144   :  { %v175_v18 = vld [vmem:[#allocation2] sm:$0xff] }
 0x1af   :  { %v179_v15 = vpop.permute.xlu0 %178 }
 0x1b0   :  { %v184_v16 = vsel %vm115_vm0, %v179_v15, 0 }
 0x1b1   :  { %1221 = vmatpush3.bf16.xpose.msra.mxu0 %v184_v16 }
 0x1b2   :  { %1226 = vmatprep.subr.bf16.mxu0 %v1497_v8 }
 0x1b3   :  { %v229_v17 = vpop.permute.xlu0 %228 }
 0x1b4   :  { %v234_v19 = vsel %vm115_vm0, %v229_v17, 0 }
 0x1b8   :  { %1223 = vmatmul.mubr.msk.bf16.vlgmr.msra.gmra.mrb[4].mxu0 %vm115_vm0, %v175_v18 }
 0x1b9   :  { %1227 = vmatpush3.bf16.xpose.msra.mxu0 %v234_v19  ;;  %1228 = vmatprep.mubr.msk.bf16.mxu0 %vm1498_vm1, %v1497_v8 }
 0x1ba   :  { %1238 = vmatprep.subr.bf16.mxu0 %v1497_v8 }
 0x1c0   :  { %1229 = vmatmul.mubr.msk.bf16.vlgmr.msra.gmra.mrb[8].mxu0 %vm115_vm0, %v176_v20 }
 0x1c1   :  { %1240 = vmatprep.mubr.msk.bf16.mxu0 %vm1498_vm1, %v1497_v8 }
 0x28b   :  { %v220_v21 = vpop.f32.mrb[4].mxu0 }
 0x28c   :  { %v1224_v22 = vpop.f32.mrb[5].mxu0  ;;  %v278_v23 = vsel %vm277_vm2, %v220_v21, -inf }
 0x28d   :  { %279 = vmax.xlane.f32.xlu1 %v278_v23  ;;  %v223_v24 = vpop.f32.mrb[6].mxu0 }
 0x28e   :  { %v1225_v25 = vpop.f32.mrb[7].mxu0  ;;  %v281_v26 = vsel %vm277_vm2, %v223_v24, -inf }
 0x291   :  { %282 = vmax.xlane.f32.xlu1 %v281_v26 }
 0x293   :  { %v270_v27 = vpop.f32.mrb[8].mxu0 }
 0x294   :  { %v1230_v28 = vpop.f32.mrb[9].mxu0  ;;  %v284_v29 = vsel %vm277_vm2, %v270_v27, -inf }
 0x295   :  { %285 = vmax.xlane.f32.xlu0 %v284_v29  ;;  %v273_v30 = vpop.f32.mrb[10].mxu0  ;;  %v1299_v28 = vld [vmem:[#allocation11 + $0x8] sm:$0xff]   ;;  %v1300_v29 = vld [vmem:[#allocation13] sm:$0xff]  }
 0x296   :  { %v1231_v31 = vpop.f32.mrb[11].mxu0  ;;  %v287_v32 = vsel %vm277_vm2, %v273_v30, -inf }
 0x297   :  { %288 = vmax.xlane.f32.xlu1 %v287_v32  ;;  %v1302_v31 = vld [vmem:[#allocation13 + $0x10] sm:$0xff]   ;;  %v1303_v32 = vld [vmem:[#allocation13 + $0x18] sm:$0xff]  }
 0x2ab   :  { %371 = vrot.lane.b32.xlu0 %v172_v12, %s1489_s7 }
 0x31a   :  { %v280_v33 = vpop.xlane.xlu1 %279 }
 0x31b   :  { %v290_v34 = vsub.f32 %v220_v21, %v280_v33  ;;  %v1304_v33 = vld [vmem:[#allocation13 + $0x20] sm:$0xff]  }
 0x31d   :  { %v294_v35 = vmul.f32 1.442695, %v290_v34  ;;  %v1305_v34 = vld [vmem:[#allocation13 + $0x28] sm:$0xff]  }
 0x31e   :  { %v283_v36 = vpop.xlane.xlu1 %282 }
 0x31f   :  { %1308 = vpow2.f32 %v294_v35  ;;  %v291_v37 = vsub.f32 %v223_v24, %v283_v36  ;;  %v522_v35 = vlaneseq }
 0x321   :  { %v296_v38 = vmul.f32 1.442695, %v291_v37  ;;  %v523_v36 = vshrl.u32 %v522_v35, 7 }
 0x322   :  { %v286_v39 = vpop.xlane.xlu0 %285 }
 0x323   :  { %1310 = vpow2.f32 %v296_v38  ;;  %v292_v40 = vsub.f32 %v270_v27, %v286_v39  ;;  %v1298_v27 = vld [vmem:[#allocation11] sm:$0xff]   ;;  %v1661_v37 = vsub.s32 0, %v523_v36 }
 0x324   :  { %v289_v41 = vpop.xlane.xlu1 %288 }
 0x325   :  { %v298_v42 = vmul.f32 1.442695, %v292_v40  ;;  %v293_v43 = vsub.f32 %v273_v30, %v289_v41  ;;  %v1301_v30 = vld [vmem:[#allocation13 + $0x8] sm:$0xff]   ;;  %v1666_v41 = vsub.s32 7, %v523_v36 }
 0x326   :  { %v372_v44 = vpop.permute.xlu0 %371 }
 0x327   :  { %1312 = vpow2.f32 %v298_v42  ;;  %v300_v45 = vmul.f32 1.442695, %v293_v43  ;;  %1239 = vmatpush3.bf16.msra.mxu0 %v372_v44 }
 0x328   :  { %1252 = vmatprep.subr.bf16.mxu0 %v1298_v27 }
 0x329   :  { %v1309_v46 = vpop.eup %1308  ;;  %1314 = vpow2.f32 %v300_v45 }
 0x32a   :  { %v302_v47 = vsel %vm277_vm2, %v1309_v46, 0.0 }
 0x32b   :  { %303 = vadd.xlane.f32.xlu1 %v302_v47 }
 0x32d   :  { %v1311_v48 = vpop.eup %1310 }
 0x32e   :  { %v305_v49 = vsel %vm277_vm2, %v1311_v48, 0.0 }
 0x32f   :  { %306 = vadd.xlane.f32.xlu1 %v305_v49 }
 0x331   :  { %v1313_v50 = vpop.eup %1312 }
 0x332   :  { %v308_v51 = vsel %vm277_vm2, %v1313_v50, 0.0 }
 0x333   :  { %v1315_v52 = vpop.eup %1314  ;;  %309 = vadd.xlane.f32.xlu1 %v308_v51 }
 0x334   :  { %v311_v53 = vsel %vm277_vm2, %v1315_v52, 0.0 }
 0x337   :  { %312 = vadd.xlane.f32.xlu1 %v311_v53 }
 0x348   :  { %324 = vrot.lane.b32.xlu1 %v1628_v14, %s1489_s7  ;;  %v1297_v14 = vld [vmem:[#allocation10 + $0x8] sm:$0xff]  }
 0x3b8   :  { %v304_v54 = vpop.xlane.xlu1 %303 }
 0x3b9   :  { %1316 = vrcp.f32 %v304_v54 }
 0x3bc   :  { %v307_v55 = vpop.xlane.xlu1 %306 }
 0x3bd   :  { %1318 = vrcp.f32 %v307_v55 }
 0x3c0   :  { %v310_v56 = vpop.xlane.xlu1 %309 }
 0x3c1   :  { %1320 = vrcp.f32 %v310_v56 }
 0x3c3   :  { %v1317_v57 = vpop.eup %1316 }
 0x3c4   :  { %v313_v58 = vpop.xlane.xlu1 %312  ;;  %v318_v59 = vmul.f32 %v1317_v57, %v1309_v46 }
 0x3c5   :  { %1322 = vrcp.f32 %v313_v58 }
 0x3c6   :  { %v1178_v60 = vpack.c.bf16 %v318_v59, %v318_v59 }
 0x3c7   :  { %v1319_v61 = vpop.eup %1318 }
 0x3c8   :  { %v325_v62 = vpop.permute.xlu1 %324  ;;  %v319_v63 = vmul.f32 %v1319_v61, %v1311_v48  ;;  %433 = vst.msk [vmem:[#allocation15] sm:$0xf] %vm432_vm3, %v1178_v60 }
 0x3c9   :  { %1233 = vmatpush3.bf16.msra.mxu1 %v325_v62 }
 0x3ca   :  { %v322_v0 = vpack.c.bf16 %v319_v63, %v318_v59  ;;  %v1179_v1 = vpack.c.bf16 %v319_v63, %v319_v63  ;;  %1244 = vmatprep.subr.bf16.mxu1 %v1296_v13 }
 0x3cb   :  { %v1321_v5 = vpop.eup %1320 }
 0x3cc   :  { %v320_v7 = vmul.f32 %v1321_v5, %v1313_v50  ;;  %1235 = vmatmul.mubr.msk.bf16.vlgmr.msra.gmra.mrb[0].mxu1 %vm277_vm2, %v322_v0  ;;  %434 = vst.msk [vmem:[#allocation15 + $0x4] sm:$0xf] %vm432_vm3, %v1179_v1 }
 0x3cd   :  { %1245 = vmatpush3.bf16.msra.mxu1 %v1296_v13 }
 0x3ce   :  { %v1180_v8 = vpack.c.bf16 %v320_v7, %v320_v7  ;;  %1246 = vmatprep.subr.bf16.mxu1 %v1297_v14 }
 0x3cf   :  { %v1323_v9 = vpop.eup %1322 }
 0x3d0   :  { %v321_v10 = vmul.f32 %v1323_v9, %v1315_v52  ;;  %435 = vst.msk [vmem:[#allocation15 + $0x8] sm:$0xf] %vm432_vm3, %v1180_v8 }
 0x3d1   :  { %1247 = vmatpush3.bf16.msra.mxu1 %v1297_v14 }
 0x3d2   :  { %v323_v11 = vpack.c.bf16 %v321_v10, %v320_v7  ;;  %v1181_v12 = vpack.c.bf16 %v321_v10, %v321_v10  ;;  %1260 = vmatprep.subr.bf16.mxu1 %v1300_v29 }
 0x3d4   :  { %1241 = vmatmul.mubr.msk.bf16.vlgmr.msra.gmra.mrb[12].mxu0 %vm277_vm2, %v323_v11  ;;  %436 = vst.msk [vmem:[#allocation15 + $0xc] sm:$0xf] %vm432_vm3, %v1181_v12 }
 0x3d5   :  { %1253 = vmatpush3.bf16.msra.mxu0 %v1298_v27 }
 0x3d6   :  { %1254 = vmatprep.subr.bf16.mxu0 %v1299_v28 }
 0x3d9   :  { %1255 = vmatpush3.bf16.msra.mxu0 %v1299_v28 }
 0x49f   :  { %v364_v15 = vpop.f32.mrb[0].mxu1 }
 0x4a0   :  { %v1236_v16 = vpop.f32.mrb[1].mxu1 }
 0x4a1   :  { %v367_v17 = vpop.f32.mrb[2].mxu1 }
 0x4a2   :  { %v437_v18 = vpack.c.bf16 %v367_v17, %v364_v15  ;;  %v1237_v19 = vpop.f32.mrb[3].mxu1 }
 0x4a4   :  { %439 = vst.msk [vmem:[#allocation3] sm:$0xff] %vm115_vm0, %v437_v18 }
 0x4a7   :  { %v411_v20 = vpop.f32.mrb[12].mxu0 }
 0x4a8   :  { %v1242_v21 = vpop.f32.mrb[13].mxu0 }
 0x4a9   :  { %v414_v22 = vpop.f32.mrb[14].mxu0 }
 0x4aa   :  { %v438_v23 = vpack.c.bf16 %v414_v22, %v411_v20  ;;  %v1243_v24 = vpop.f32.mrb[15].mxu0 }
 0x4ab   :  { %v441_v25 = vld [vmem:[#allocation3] sm:$0xff] }
 0x4ac   :  { %440 = vst.msk [vmem:[#allocation3 + $0x8] sm:$0xff] %vm115_vm0, %v438_v23  ;;  %1248 = vmatprep.mubr.msk.bf16.mxu1 %vm115_vm0, %v441_v25 }
 0x4b3   :  { %v442_v26 = vld [vmem:[#allocation3 + $0x8] sm:$0xff] }
 0x4b4   :  { %1249 = vmatmul.mubr.msk.bf16.vlgmr.msra.gmra.mrb[4].mxu1 %vm115_vm0, %v442_v26 }
 0x4b5   :  { %1261 = vmatpush3.bf16.msra.mxu1 %v1300_v29 }
 0x4b6   :  { %1262 = vmatprep.subr.bf16.mxu1 %v1301_v30 }
 0x4b9   :  { %1263 = vmatpush3.bf16.msra.mxu1 %v1301_v30 }
 0x4ba   :  { %1264 = vmatprep.subr.bf16.mxu1 %v1302_v31 }
 0x4bd   :  { %1265 = vmatpush3.bf16.msra.mxu1 %v1302_v31 }
 0x4be   :  { %1266 = vmatprep.subr.bf16.mxu1 %v1303_v32 }
 0x4c1   :  { %1267 = vmatpush3.bf16.msra.mxu1 %v1303_v32 }
 0x4c2   :  { %1268 = vmatprep.subr.bf16.mxu1 %v1304_v33 }
 0x4c5   :  { %1269 = vmatpush3.bf16.msra.mxu1 %v1304_v33 }
 0x4c6   :  { %1270 = vmatprep.subr.bf16.mxu1 %v1305_v34 }
 0x4c9   :  { %1271 = vmatpush3.bf16.msra.mxu1 %v1305_v34 }
 0x587   :  { %v1250_v38 = vpop.f32.mrb[4].mxu1 }
 0x588   :  { %v1664_v39 = vadd.f32 %v1250_v38, %v1616_v4  ;;  %v499_v40 = vpop.f32.mrb[5].mxu1 }
 0x589   :  { %v1669_v42 = vadd.f32 %v499_v40, %v1612_v2  ;;  %v1251_v43 = vpop.f32.mrb[6].mxu1 }
 0x58a   :  { %520 = vst.msk [vmem:[#allocation4 + $0x34] sm:$0xff] %vm115_vm0, %v1664_v39  ;;  %v529_v44 = vrot.slane %v1664_v39, %v1661_v37  ;;  %v1676_v45 = vadd.f32 %v1251_v43, %v1620_v6  ;;  %v502_v46 = vpop.f32.mrb[7].mxu1 }
 0x58b   :  { %518 = vst.msk [vmem:[#allocation4 + $0xc] sm:$0xff] %vm115_vm0, %v1669_v42  ;;  %v525_v4 = vrot.slane %v1669_v42, %v1661_v37  ;;  %v1683_v2 = vadd.f32 %v502_v46, %v1614_v3 }
 0x58c   :  { %533 = vst.msk [vmem:[#allocation4 + $0x28] sm:$0xff] %vm115_vm0, %v529_v44  ;;  %521 = vst.msk [vmem:[#allocation4 + $0x3c] sm:$0xff] %vm115_vm0, %v1676_v45  ;;  %v542_v6 = vrot.slane %v1676_v45, %v1666_v41 }
 0x58d   :  { %534 = vst.msk [vmem:[#allocation4 + $0x30] sm:$0xf] %vm531_vm4, %v529_v44  ;;  %532 = vst.msk [vmem:[#allocation4 + $0x8] sm:$0xf] %vm531_vm4, %v525_v4  ;;  %v538_v3 = vrot.slane %v1683_v2, %v1666_v41 }
 0x58e   :  { %530 = vst.msk [vmem:[#allocation4] sm:$0xff] %vm115_vm0, %v525_v4  ;;  %519 = vst.msk [vmem:[#allocation4 + $0x14] sm:$0xff] %vm115_vm0, %v1683_v2 }
 0x58f   :  { %545 = vst.msk [vmem:[#allocation4 + $0x44] sm:$0xff] %vm115_vm0, %v542_v6  ;;  %543 = vst.msk [vmem:[#allocation4 + $0x1c] sm:$0xff] %vm115_vm0, %v538_v3 }
 0x590   :  { %546 = vst.msk [vmem:[#allocation4 + $0x4c] sm:$0xf] %vm531_vm4, %v542_v6  ;;  %544 = vst.msk [vmem:[#allocation4 + $0x24] sm:$0xf] %vm531_vm4, %v538_v3 }
 0x591   :  { %v578_v9 = vld [vmem:[#allocation4 + $0x34] sm:$0xff] }
 0x592   :  { %v576_v26 = vld [vmem:[#allocation4 + $0xc] sm:$0xff] }
 0x593   :  { %v549_v47 = vld [vmem:[#allocation4 + $0x28] sm:$0xff]  ;;  %v586_v20 = vld [vmem:[#allocation4 + $0x35] sm:$0xff] }
 0x594   :  { %v550_v48 = vld [vmem:[#allocation4 + $0x30] sm:$0xff]  ;;  %v548_v59 = vld [vmem:[#allocation4 + $0x8] sm:$0xff]  ;;  %v608_v46 = vld [vmem:[#allocation4 + $0x38] sm:$0xff] }
 0x595   :  { %v553_v49 = vld [vmem:[#allocation4 + $0x29] sm:$0xff]  ;;  %v554_v50 = vld [vmem:[#allocation4 + $0x31] sm:$0xff]  ;;  %v547_v58 = vld [vmem:[#allocation4] sm:$0xff] }
 0x596   :  { %v557_v51 = vadd.f32 %v553_v49, %v549_v47  ;;  %v558_v52 = vadd.f32 %v554_v50, %v550_v48  ;;  %v561_v53 = vld [vmem:[#allocation4 + $0x2a] sm:$0xff]  ;;  %v562_v54 = vld [vmem:[#allocation4 + $0x32] sm:$0xff]  ;;  %v551_v60 = vld [vmem:[#allocation4 + $0x1] sm:$0xff] }
 0x597   :  { %v569_v56 = vld [vmem:[#allocation4 + $0x2b] sm:$0xff]  ;;  %v570_v61 = vld [vmem:[#allocation4 + $0x33] sm:$0xff]  ;;  %v555_v0 = vadd.f32 %v551_v60, %v547_v58  ;;  %v559_v8 = vld [vmem:[#allocation4 + $0x2] sm:$0xff] }
 0x598   :  { %v565_v55 = vadd.f32 %v561_v53, %v557_v51  ;;  %v566_v57 = vadd.f32 %v562_v54, %v558_v52  ;;  %v552_v63 = vld [vmem:[#allocation4 + $0x9] sm:$0xff]  ;;  %v594_v28 = vld [vmem:[#allocation4 + $0x36] sm:$0xff] }
 0x599   :  { %v577_v5 = vld [vmem:[#allocation4 + $0x2c] sm:$0xff]  ;;  %v556_v7 = vadd.f32 %v552_v63, %v548_v59  ;;  %v563_v12 = vadd.f32 %v559_v8, %v555_v0  ;;  %v567_v16 = vld [vmem:[#allocation4 + $0x3] sm:$0xff]  ;;  %v602_v35 = vld [vmem:[#allocation4 + $0x37] sm:$0xff] }
 0x59a   :  { %v573_v62 = vadd.f32 %v569_v56, %v565_v55  ;;  %v574_v1 = vadd.f32 %v570_v61, %v566_v57  ;;  %v560_v11 = vld [vmem:[#allocation4 + $0xa] sm:$0xff]  ;;  %v614_v52 = vld [vmem:[#allocation4 + $0x39] sm:$0xff] }
 0x59b   :  { %v585_v14 = vld [vmem:[#allocation4 + $0x2d] sm:$0xff]  ;;  %v564_v15 = vadd.f32 %v560_v11, %v556_v7  ;;  %v571_v19 = vadd.f32 %v567_v16, %v563_v12  ;;  %v575_v23 = vld [vmem:[#allocation4 + $0x4] sm:$0xff]  ;;  %v620_v58 = vld [vmem:[#allocation4 + $0x3a] sm:$0xff] }
 0x59c   :  { %v581_v10 = vadd.f32 %v577_v5, %v573_v62  ;;  %v582_v13 = vadd.f32 %v578_v9, %v574_v1  ;;  %v568_v18 = vld [vmem:[#allocation4 + $0xb] sm:$0xff] }
 0x59d   :  { %v593_v21 = vld [vmem:[#allocation4 + $0x2e] sm:$0xff]  ;;  %v572_v22 = vadd.f32 %v568_v18, %v564_v15  ;;  %v579_v27 = vadd.f32 %v575_v23, %v571_v19  ;;  %v583_v31 = vld [vmem:[#allocation4 + $0x5] sm:$0xff]  ;;  %v638_v19 = vld [vmem:[#allocation4 + $0x3d] sm:$0xff] }
 0x59e   :  { %v589_v17 = vadd.f32 %v585_v14, %v581_v10  ;;  %v590_v24 = vadd.f32 %v586_v20, %v582_v13  ;;  %v601_v29 = vld [vmem:[#allocation4 + $0x2f] sm:$0xff]  ;;  %v591_v36 = vld [vmem:[#allocation4 + $0x6] sm:$0xff]  ;;  %v632_v13 = vld [vmem:[#allocation4 + $0x3c] sm:$0xff] }
 0x59f   :  { %v580_v30 = vadd.f32 %v576_v26, %v572_v22  ;;  %v587_v34 = vadd.f32 %v583_v31, %v579_v27  ;;  %v584_v40 = vld [vmem:[#allocation4 + $0xd] sm:$0xff] }
 0x5a0   :  { %v597_v25 = vadd.f32 %v593_v21, %v589_v17  ;;  %v598_v32 = vadd.f32 %v594_v28, %v590_v24  ;;  %v599_v6 = vld [vmem:[#allocation4 + $0x7] sm:$0xff]  ;;  %v600_v56 = vld [vmem:[#allocation4 + $0xf] sm:$0xff]  ;;  %v644_v24 = vld [vmem:[#allocation4 + $0x3e] sm:$0xff] }
 0x5a1   :  { %v595_v44 = vadd.f32 %v591_v36, %v587_v34  ;;  %v588_v4 = vadd.f32 %v584_v40, %v580_v30  ;;  %v592_v47 = vld [vmem:[#allocation4 + $0xe] sm:$0xff]  ;;  %v650_v30 = vld [vmem:[#allocation4 + $0x3f] sm:$0xff] }
 0x5a2   :  { %v605_v33 = vadd.f32 %v601_v29, %v597_v25  ;;  %v606_v38 = vadd.f32 %v602_v35, %v598_v32  ;;  %v607_v1 = vld [vmem:[#allocation4 + $0x10] sm:$0xff]  ;;  %v656_v34 = vld [vmem:[#allocation4 + $0x40] sm:$0xff] }
 0x5a3   :  { %v603_v51 = vadd.f32 %v599_v6, %v595_v44  ;;  %v596_v53 = vadd.f32 %v592_v47, %v588_v4  ;;  %v613_v12 = vld [vmem:[#allocation4 + $0x11] sm:$0xff]  ;;  %v662_v44 = vld [vmem:[#allocation4 + $0x41] sm:$0xff] }
 0x5a4   :  { %v611_v43 = vadd.f32 %v605_v33, %v550_v48  ;;  %v612_v3 = vadd.f32 %v608_v46, %v606_v38  ;;  %v626_v48 = vld [vmem:[#allocation4 + $0x3b] sm:$0xff]  ;;  %v619_v17 = vld [vmem:[#allocation4 + $0x12] sm:$0xff] }
 0x5a5   :  { %v609_v57 = vadd.f32 %v603_v51, %v548_v59  ;;  %v604_v62 = vadd.f32 %v600_v56, %v596_v53  ;;  %v625_v23 = vld [vmem:[#allocation4 + $0x13] sm:$0xff] }
 0x5a6   :  { %v617_v49 = vadd.f32 %v611_v43, %v554_v50  ;;  %v618_v55 = vadd.f32 %v614_v52, %v612_v3  ;;  %v631_v29 = vld [vmem:[#allocation4 + $0x14] sm:$0xff] }
 0x5a7   :  { %v615_v5 = vadd.f32 %v609_v57, %v552_v63  ;;  %v610_v8 = vadd.f32 %v607_v1, %v604_v62  ;;  %v674_v57 = vld [vmem:[#allocation4 + $0x43] sm:$0xff] }
 0x5a8   :  { %v623_v60 = vadd.f32 %v617_v49, %v562_v54  ;;  %v624_v0 = vadd.f32 %v620_v58, %v618_v55  ;;  %v668_v49 = vld [vmem:[#allocation4 + $0x42] sm:$0xff] }
 0x5a9   :  { %v616_v50 = vadd.f32 %v613_v12, %v610_v8  ;;  %v621_v15 = vadd.f32 %v615_v5, %v560_v11  ;;  %v637_v11 = vld [vmem:[#allocation4 + $0x15] sm:$0xff]  ;;  %v680_v5 = vld [vmem:[#allocation4 + $0x44] sm:$0xff] }
 0x5aa   :  { %v629_v7 = vadd.f32 %v623_v60, %v570_v61  ;;  %v630_v10 = vadd.f32 %v626_v48, %v624_v0 }
 0x5ab   :  { %v622_v59 = vadd.f32 %v619_v17, %v616_v50  ;;  %v627_v22 = vadd.f32 %v621_v15, %v568_v18  ;;  %v643_v18 = vld [vmem:[#allocation4 + $0x16] sm:$0xff] }
 0x5ac   :  { %v635_v14 = vadd.f32 %v629_v7, %v578_v9  ;;  %v636_v16 = vadd.f32 %v632_v13, %v630_v10 }
 0x5ad   :  { %v628_v63 = vadd.f32 %v625_v23, %v622_v59  ;;  %v633_v27 = vadd.f32 %v627_v22, %v576_v26  ;;  %v649_v26 = vld [vmem:[#allocation4 + $0x17] sm:$0xff] }
 0x5ae   :  { %v641_v21 = vadd.f32 %v635_v14, %v586_v20  ;;  %v642_v54 = vadd.f32 %v638_v19, %v636_v16  ;;  %v686_v14 = vld [vmem:[#allocation4 + $0x45] sm:$0xff] }
 0x5af   :  { %v634_v32 = vadd.f32 %v631_v29, %v628_v63  ;;  %v639_v9 = vadd.f32 %v633_v27, %v584_v40  ;;  %v655_v40 = vld [vmem:[#allocation4 + $0x18] sm:$0xff] }
 0x5b0   :  { %v647_v25 = vadd.f32 %v641_v21, %v594_v28  ;;  %v648_v61 = vadd.f32 %v644_v24, %v642_v54  ;;  %v692_v21 = vld [vmem:[#allocation4 + $0x46] sm:$0xff] }
 0x5b1   :  { %v640_v38 = vadd.f32 %v637_v11, %v634_v32  ;;  %v645_v20 = vadd.f32 %v639_v9, %v592_v47  ;;  %v661_v47 = vld [vmem:[#allocation4 + $0x19] sm:$0xff] }
 0x5b2   :  { %v653_v31 = vadd.f32 %v647_v25, %v602_v35  ;;  %v654_v33 = vadd.f32 %v650_v30, %v648_v61  ;;  %v698_v25 = vld [vmem:[#allocation4 + $0x47] sm:$0xff] }
 0x5b3   :  { %v646_v6 = vadd.f32 %v643_v18, %v640_v38  ;;  %v651_v28 = vadd.f32 %v645_v20, %v600_v56  ;;  %v667_v56 = vld [vmem:[#allocation4 + $0x1a] sm:$0xff] }
 0x5b4   :  { %v659_v36 = vadd.f32 %v653_v31, %v608_v46  ;;  %v660_v43 = vadd.f32 %v656_v34, %v654_v33  ;;  %v704_v31 = vld [vmem:[#allocation4 + $0x48] sm:$0xff]  ;;  %v697_v20 = vld [vmem:[#allocation4 + $0x1f] sm:$0xff] }
 0x5b5   :  { %v652_v53 = vadd.f32 %v649_v26, %v646_v6  ;;  %v657_v35 = vadd.f32 %v651_v28, %v607_v1  ;;  %v673_v1 = vld [vmem:[#allocation4 + $0x1b] sm:$0xff] }
 0x5b6   :  { %v665_v4 = vadd.f32 %v659_v36, %v614_v52  ;;  %v666_v3 = vadd.f32 %v662_v44, %v660_v43 }
 0x5b7   :  { %v658_v62 = vadd.f32 %v655_v40, %v652_v53  ;;  %v663_v46 = vadd.f32 %v657_v35, %v613_v12  ;;  %v679_v12 = vld [vmem:[#allocation4 + $0x1c] sm:$0xff] }
 0x5b8   :  { %v671_v51 = vadd.f32 %v665_v4, %v620_v58  ;;  %v672_v55 = vadd.f32 %v668_v49, %v666_v3  ;;  %v703_v4 = vld [vmem:[#allocation4 + $0x20] sm:$0xff]  ;;  %v1307_v53 = vld [vmem:[#allocation13 + $0x38] sm:$0xff]  }
 0x5b9   :  { %v664_v8 = vadd.f32 %v661_v47, %v658_v62  ;;  %v669_v52 = vadd.f32 %v663_v46, %v619_v17  ;;  %v685_v17 = vld [vmem:[#allocation4 + $0x1d] sm:$0xff] }
 0x5ba   :  { %v677_v60 = vadd.f32 %v671_v51, %v626_v48  ;;  %v678_v0 = vadd.f32 %v674_v57, %v672_v55 }
 0x5bb   :  { %v670_v15 = vadd.f32 %v667_v56, %v664_v8  ;;  %v675_v58 = vadd.f32 %v669_v52, %v625_v23  ;;  %v691_v23 = vld [vmem:[#allocation4 + $0x1e] sm:$0xff] }
 0x5bc   :  { %v683_v7 = vadd.f32 %v677_v60, %v632_v13  ;;  %v684_v10 = vadd.f32 %v680_v5, %v678_v0 }
 0x5bd   :  { %v676_v22 = vadd.f32 %v673_v1, %v670_v15  ;;  %v681_v48 = vadd.f32 %v675_v58, %v631_v29 }
 0x5be   :  { %v689_v50 = vadd.f32 %v683_v7, %v638_v19  ;;  %v690_v16 = vadd.f32 %v686_v14, %v684_v10 }
 0x5bf   :  { %v682_v27 = vadd.f32 %v679_v12, %v676_v22  ;;  %v687_v13 = vadd.f32 %v681_v48, %v637_v11 }
 0x5c0   :  { %v695_v59 = vadd.f32 %v689_v50, %v644_v24  ;;  %v696_v54 = vadd.f32 %v692_v21, %v690_v16 }
 0x5c1   :  { %v688_v32 = vadd.f32 %v685_v17, %v682_v27  ;;  %v693_v9 = vadd.f32 %v687_v13, %v643_v18 }
 0x5c2   :  { %v701_v63 = vadd.f32 %v695_v59, %v650_v30  ;;  %v702_v61 = vadd.f32 %v698_v25, %v696_v54 }
 0x5c3   :  { %v694_v36 = vadd.f32 %v691_v23, %v688_v32  ;;  %v699_v38 = vadd.f32 %v693_v9, %v649_v26  ;;  %v1306_v26 = vld [vmem:[#allocation13 + $0x30] sm:$0xff]  }
 0x5c4   :  { %v707_v19 = vadd.f32 %v701_v63, %v656_v34  ;;  %v708_v33 = vadd.f32 %v704_v31, %v702_v61  ;;  %1272 = vmatprep.subr.bf16.mxu1 %v1306_v26 }
 0x5c5   :  { %v700_v24 = vadd.f32 %v697_v20, %v694_v36  ;;  %v705_v43 = vadd.f32 %v699_v38, %v655_v40  ;;  %1273 = vmatpush3.bf16.msra.mxu1 %v1306_v26 }
 0x5c6   :  { %v711_v29 = vmul.f32 0.04, %v707_v19  ;;  %v712_v44 = vmul.f32 0.04, %v708_v33  ;;  %1274 = vmatprep.subr.bf16.mxu1 %v1307_v53 }
 0x5c7   :  { %v706_v6 = vadd.f32 %v703_v4, %v700_v24  ;;  %v709_v30 = vmul.f32 0.04, %v705_v43 }
 0x5c8   :  { %v715_v3 = vsub.f32 %v1664_v39, %v711_v29  ;;  %v716_v18 = vsub.f32 %v1676_v45, %v712_v44 }
 0x5c9   :  { %v710_v28 = vmul.f32 0.04, %v706_v6  ;;  %v713_v11 = vsub.f32 %v1669_v42, %v709_v30  ;;  %1275 = vmatpush3.bf16.msra.mxu1 %v1307_v53 }
 0x5ca   :  { %v718_v51 = vpack.c.bf16 %v716_v18, %v715_v3 }
 0x5cb   :  { %v714_v34 = vsub.f32 %v1683_v2, %v710_v28 }
 0x5cd   :  { %v717_v49 = vpack.c.bf16 %v714_v34, %v713_v11 }
 0x5cf   :  { %1256 = vmatprep.mubr.msk.bf16.mxu0 %vm115_vm0, %v717_v49 }
 0x5d0   :  { %1257 = vmatmul.mubr.msk.bf16.vlgmr.msra.gmra.mrb[16].mxu0 %vm115_vm0, %v718_v51 }
 0x6a3   :  { %v1258_v35 = vpop.f32.mrb[16].mxu0 }
 0x6a4   :  { %v775_v42 = vpop.f32.mrb[17].mxu0  ;;  %v792_v39 = vmax.f32 %v1258_v35, 0.0 }
 0x6a5   :  { %v1259_v55 = vpop.f32.mrb[18].mxu0  ;;  %v790_v57 = vmax.f32 %v775_v42, 0.0 }
 0x6a6   :  { %v793_v40 = vmax.f32 %v1259_v55, 0.0  ;;  %v778_v45 = vpop.f32.mrb[19].mxu0 }
 0x6a7   :  { %v791_v2 = vmax.f32 %v778_v45, 0.0 }
 0x6a8   :  { %v795_v60 = vpack.c.bf16 %v793_v40, %v792_v39 }
 0x6a9   :  { %v794_v62 = vpack.c.bf16 %v791_v2, %v790_v57 }
 0x6ab   :  { %1276 = vmatprep.mubr.bf16.mxu1 %v794_v62 }
 0x6ac   :  { %1277 = vmatmul.mubr.bf16.vlgmr.msra.gmra.mrb[8].mxu1 %v795_v60 }
 0x6ad   :  { %1445 = shalt.err (!%p1442_p2)
}
 0x6ae   :  { %s1446_s19 = scalar_lea.hbm %s1911_s6, 256 }
 0x6af   :  { %p1447_p3 = scmp.ne.s32.totalorder %s1911_s6, %s1446_s19  ;;  %p1450_p4 = scmp.lt.u32.totalorder %s1446_s19, %s1911_s6 }
 0x6b1   :  { %p1452_p5 = pnand %p1450_p4, %p1447_p3 }
 0x6b3   :  { %1455 = shalt.err (!%p1452_p5)
}
 0x6b4   :  { %1138 = dma.vmem_to_hbm [thread:$0]  %s1133_s15, 256, %s1911_s6, [#allocation16], %s1489_s7, %s1489_s7, %s1490_s8  }
 0x6b5   :  { %s1501_s6 = smov [#allocation14]  }
 0x6b6   :  { %s1120_s7 = sshll.u32 %s1501_s6, 4  ;;  %s1121_s7 = int_to_ptr.vmem [resolvable:$true] %s1120_s7 }
 0x6b7   :  { %s1456_s8 = scalar_lea.vmem %s1121_s7, 512  ;;  %p1461_p7 = scmp.lt.s32.totalorder %s1121_s7, %s1121_s7 }
 0x6b8   :  { %p1457_p6 = scmp.ne.s32.totalorder %s1121_s7, %s1456_s8  ;;  %p1462_p8 = scmp.lt.s32.totalorder %s1456_s8, %s1456_s8 }
 0x6ba   :  { %p1463_p9 = por %p1462_p8, %p1461_p7 }
 0x6bc   :  { %p1464_p10 = pnand %p1463_p9, %p1457_p6 }
 0x77f   :  { %v1278_v46 = vpop.f32.mrb[8].mxu1 }
 0x780   :  { %v1722_v0 = vadd.f32 %v1278_v46, %v715_v3  ;;  %v894_v47 = vpop.f32.mrb[9].mxu1 }
 0x781   :  { %v1724_v5 = vadd.f32 %v894_v47, %v713_v11  ;;  %v1279_v7 = vpop.f32.mrb[10].mxu1 }
 0x782   :  { %v924_v8 = vrot.slane %v1722_v0, %v1661_v37  ;;  %915 = vst.msk [vmem:[#allocation4 + $0x34] sm:$0xff] %vm115_vm0, %v1722_v0  ;;  %v1730_v52 = vadd.f32 %v1279_v7, %v716_v18  ;;  %v897_v10 = vpop.f32.mrb[11].mxu1 }
 0x783   :  { %v920_v56 = vrot.slane %v1724_v5, %v1661_v37  ;;  %913 = vst.msk [vmem:[#allocation4 + $0xc] sm:$0xff] %vm115_vm0, %v1724_v5  ;;  %v1736_v14 = vadd.f32 %v897_v10, %v714_v34 }
 0x784   :  { %927 = vst.msk [vmem:[#allocation4 + $0x28] sm:$0xff] %vm115_vm0, %v924_v8  ;;  %916 = vst.msk [vmem:[#allocation4 + $0x3c] sm:$0xff] %vm115_vm0, %v1730_v52  ;;  %v936_v50 = vrot.slane %v1730_v52, %v1666_v41 }
 0x785   :  { %928 = vst.msk [vmem:[#allocation4 + $0x30] sm:$0xf] %vm531_vm4, %v924_v8  ;;  %926 = vst.msk [vmem:[#allocation4 + $0x8] sm:$0xf] %vm531_vm4, %v920_v56  ;;  %v932_v37 = vrot.slane %v1736_v14, %v1666_v41 }
 0x786   :  { %925 = vst.msk [vmem:[#allocation4] sm:$0xff] %vm115_vm0, %v920_v56  ;;  %914 = vst.msk [vmem:[#allocation4 + $0x14] sm:$0xff] %vm115_vm0, %v1736_v14 }
 0x787   :  { %939 = vst.msk [vmem:[#allocation4 + $0x44] sm:$0xff] %vm115_vm0, %v936_v50  ;;  %937 = vst.msk [vmem:[#allocation4 + $0x1c] sm:$0xff] %vm115_vm0, %v932_v37 }
 0x788   :  { %940 = vst.msk [vmem:[#allocation4 + $0x4c] sm:$0xf] %vm531_vm4, %v936_v50  ;;  %938 = vst.msk [vmem:[#allocation4 + $0x24] sm:$0xf] %vm531_vm4, %v932_v37 }
 0x789   :  { %v1766_v22 = vld [vmem:[#allocation4 + $0x34] sm:$0xff] }
 0x78a   :  { %v1792_v36 = vld [vmem:[#allocation4 + $0xc] sm:$0xff] }
 0x78b   :  { %v1769_v54 = vld [vmem:[#allocation4 + $0x35] sm:$0xff]  ;;  %v943_v44 = vld [vmem:[#allocation4 + $0x28] sm:$0xff] }
 0x78c   :  { %v1754_v15 = vld [vmem:[#allocation4 + $0x30] sm:$0xff]  ;;  %v1771_v12 = vld [vmem:[#allocation4 + $0x8] sm:$0xff]  ;;  %v1790_v23 = vld [vmem:[#allocation4 + $0x38] sm:$0xff] }
 0x78d   :  { %v1756_v58 = vld [vmem:[#allocation4 + $0x31] sm:$0xff]  ;;  %v1773_v25 = vld [vmem:[#allocation4 + $0x9] sm:$0xff]  ;;  %v1795_v20 = vld [vmem:[#allocation4 + $0x39] sm:$0xff] }
 0x78e   :  { %v952_v16 = vadd.f32 %v1756_v58, %v1754_v15  ;;  %v1760_v1 = vld [vmem:[#allocation4 + $0x32] sm:$0xff]  ;;  %v950_v27 = vadd.f32 %v1773_v25, %v1771_v12  ;;  %v1780_v61 = vld [vmem:[#allocation4 + $0xa] sm:$0xff]  ;;  %v941_v29 = vld [vmem:[#allocation4] sm:$0xff] }
 0x78f   :  { %v1763_v41 = vld [vmem:[#allocation4 + $0x33] sm:$0xff]  ;;  %v1786_v9 = vld [vmem:[#allocation4 + $0xb] sm:$0xff]  ;;  %v945_v4 = vld [vmem:[#allocation4 + $0x1] sm:$0xff] }
 0x790   :  { %v960_v21 = vadd.f32 %v1760_v1, %v952_v16  ;;  %v1778_v13 = vld [vmem:[#allocation4 + $0x36] sm:$0xff]  ;;  %v958_v31 = vadd.f32 %v1780_v61, %v950_v27  ;;  %v1798_v43 = vld [vmem:[#allocation4 + $0xd] sm:$0xff]  ;;  %v949_v11 = vadd.f32 %v945_v4, %v941_v29  ;;  %v953_v49 = vld [vmem:[#allocation4 + $0x2] sm:$0xff] }
 0x791   :  { %v1784_v32 = vld [vmem:[#allocation4 + $0x37] sm:$0xff]  ;;  %v947_v28 = vld [vmem:[#allocation4 + $0x29] sm:$0xff] }
 0x792   :  { %v968_v59 = vadd.f32 %v1763_v41, %v960_v21  ;;  %v966_v33 = vadd.f32 %v1786_v9, %v958_v31  ;;  %v1802_v3 = vld [vmem:[#allocation4 + $0x3a] sm:$0xff]  ;;  %v1804_v18 = vld [vmem:[#allocation4 + $0xe] sm:$0xff]  ;;  %v951_v34 = vadd.f32 %v947_v28, %v943_v44  ;;  %v957_v35 = vadd.f32 %v953_v49, %v949_v11  ;;  %v961_v40 = vld [vmem:[#allocation4 + $0x3] sm:$0xff] }
 0x793   :  { %v955_v53 = vld [vmem:[#allocation4 + $0x2a] sm:$0xff]  ;;  %v1808_v42 = vld [vmem:[#allocation4 + $0x3b] sm:$0xff] }
 0x794   :  { %v976_v48 = vadd.f32 %v1766_v22, %v968_v59  ;;  %v974_v24 = vadd.f32 %v1792_v36, %v966_v33  ;;  %v1810_v55 = vld [vmem:[#allocation4 + $0xf] sm:$0xff]  ;;  %v959_v39 = vadd.f32 %v955_v53, %v951_v34  ;;  %v965_v60 = vadd.f32 %v961_v40, %v957_v35  ;;  %v1814_v62 = vld [vmem:[#allocation4 + $0x3c] sm:$0xff]  ;;  %v969_v7 = vld [vmem:[#allocation4 + $0x4] sm:$0xff] }
 0x795   :  { %v963_v2 = vld [vmem:[#allocation4 + $0x2b] sm:$0xff]  ;;  %v1820_v37 = vld [vmem:[#allocation4 + $0x3d] sm:$0xff]  ;;  %v1840_v35 = vld [vmem:[#allocation4 + $0x14] sm:$0xff] }
 0x796   :  { %v984_v63 = vadd.f32 %v1769_v54, %v976_v48  ;;  %v982_v30 = vadd.f32 %v1798_v43, %v974_v24  ;;  %v1816_v46 = vld [vmem:[#allocation4 + $0x10] sm:$0xff]  ;;  %v967_v47 = vadd.f32 %v963_v2, %v959_v39  ;;  %v973_v50 = vadd.f32 %v969_v7, %v965_v60  ;;  %v977_v59 = vld [vmem:[#allocation4 + $0x5] sm:$0xff] }
 0x797   :  { %v971_v56 = vld [vmem:[#allocation4 + $0x2c] sm:$0xff]  ;;  %v1826_v31 = vld [vmem:[#allocation4 + $0x3e] sm:$0xff]  ;;  %v1845_v60 = vld [vmem:[#allocation4 + $0x15] sm:$0xff] }
 0x798   :  { %v992_v17 = vadd.f32 %v1778_v13, %v984_v63  ;;  %v990_v26 = vadd.f32 %v1804_v18, %v982_v30  ;;  %v1822_v16 = vld [vmem:[#allocation4 + $0x11] sm:$0xff]  ;;  %v975_v21 = vadd.f32 %v971_v56, %v967_v47  ;;  %v993_v11 = vld [vmem:[#allocation4 + $0x7] sm:$0xff] }
 0x799   :  { %v979_v27 = vld [vmem:[#allocation4 + $0x2d] sm:$0xff]  ;;  %v1838_v53 = vld [vmem:[#allocation4 + $0x40] sm:$0xff] }
 0x79a   :  { %v1000_v19 = vadd.f32 %v1784_v32, %v992_v17  ;;  %v998_v57 = vadd.f32 %v1810_v55, %v990_v26  ;;  %v981_v17 = vadd.f32 %v977_v59, %v973_v50  ;;  %v983_v33 = vadd.f32 %v979_v27, %v975_v21  ;;  %v987_v44 = vld [vmem:[#allocation4 + $0x2e] sm:$0xff]  ;;  %v1056_v2 = vld [vmem:[#allocation4 + $0x41] sm:$0xff]  ;;  %v1850_v50 = vld [vmem:[#allocation4 + $0x16] sm:$0xff] }
 0x79b   :  { %v1834_v30 = vld [vmem:[#allocation4 + $0x13] sm:$0xff]  ;;  %v1062_v56 = vld [vmem:[#allocation4 + $0x42] sm:$0xff] }
 0x79c   :  { %v1006_v38 = vadd.f32 %v1790_v23, %v1000_v19  ;;  %v1004_v10 = vadd.f32 %v1816_v46, %v998_v57  ;;  %v1828_v19 = vld [vmem:[#allocation4 + $0x12] sm:$0xff]  ;;  %v991_v28 = vadd.f32 %v987_v44, %v983_v33 }
 0x79d   :  { %v1043_v27 = vld [vmem:[#allocation4 + $0x17] sm:$0xff] }
 0x79e   :  { %v1012_v6 = vadd.f32 %v1795_v20, %v1006_v38  ;;  %v1010_v63 = vadd.f32 %v1822_v16, %v1004_v10  ;;  %v985_v38 = vld [vmem:[#allocation4 + $0x6] sm:$0xff] }
 0x79f   :  { %v989_v4 = vadd.f32 %v985_v38, %v981_v17 }
 0x7a0   :  { %v1018_v51 = vadd.f32 %v1802_v3, %v1012_v6  ;;  %v1016_v29 = vadd.f32 %v1828_v19, %v1010_v63  ;;  %v1832_v6 = vld [vmem:[#allocation4 + $0x3f] sm:$0xff] }
 0x7a1   :  { %v997_v26 = vadd.f32 %v993_v11, %v989_v4  ;;  %v1068_v63 = vld [vmem:[#allocation4 + $0x43] sm:$0xff]  ;;  %v1055_v11 = vld [vmem:[#allocation4 + $0x19] sm:$0xff] }
 0x7a2   :  { %v1024_v45 = vadd.f32 %v1808_v42, %v1018_v51  ;;  %v1022_v49 = vadd.f32 %v1834_v30, %v1016_v29  ;;  %v995_v51 = vld [vmem:[#allocation4 + $0x2f] sm:$0xff] }
 0x7a3   :  { %v999_v39 = vadd.f32 %v995_v51, %v991_v28  ;;  %v1003_v57 = vadd.f32 %v997_v26, %v1771_v12  ;;  %v1080_v28 = vld [vmem:[#allocation4 + $0x45] sm:$0xff]  ;;  %v1061_v26 = vld [vmem:[#allocation4 + $0x1a] sm:$0xff] }
 0x7a4   :  { %v1030_v8 = vadd.f32 %v1814_v62, %v1024_v45  ;;  %v1028_v45 = vadd.f32 %v1840_v35, %v1022_v49  ;;  %v1086_v51 = vld [vmem:[#allocation4 + $0x46] sm:$0xff] }
 0x7a5   :  { %v1005_v47 = vadd.f32 %v999_v39, %v1754_v15  ;;  %v1009_v10 = vadd.f32 %v1003_v57, %v1773_v25  ;;  %v1049_v25 = vld [vmem:[#allocation4 + $0x18] sm:$0xff] }
 0x7a6   :  { %v1036_v48 = vadd.f32 %v1820_v37, %v1030_v8  ;;  %v1034_v8 = vadd.f32 %v1845_v60, %v1028_v45  ;;  %v1092_v45 = vld [vmem:[#allocation4 + $0x47] sm:$0xff]  ;;  %v1067_v57 = vld [vmem:[#allocation4 + $0x1b] sm:$0xff] }
 0x7a7   :  { %v1011_v21 = vadd.f32 %v1005_v47, %v1756_v58  ;;  %v1015_v12 = vadd.f32 %v1009_v10, %v1780_v61 }
 0x7a8   :  { %v1042_v24 = vadd.f32 %v1826_v31, %v1036_v48  ;;  %v1040_v48 = vadd.f32 %v1850_v50, %v1034_v8  ;;  %v1073_v8 = vld [vmem:[#allocation4 + $0x1c] sm:$0xff] }
 0x7a9   :  { %v1017_v17 = vadd.f32 %v1011_v21, %v1760_v1  ;;  %v1021_v38 = vadd.f32 %v1015_v12, %v1786_v9  ;;  %v1079_v21 = vld [vmem:[#allocation4 + $0x1d] sm:$0xff] }
 0x7aa   :  { %v1048_v34 = vadd.f32 %v1832_v6, %v1042_v24  ;;  %v1046_v33 = vadd.f32 %v1043_v27, %v1040_v48  ;;  %v1074_v24 = vld [vmem:[#allocation4 + $0x44] sm:$0xff] }
 0x7ab   :  { %v1023_v29 = vadd.f32 %v1017_v17, %v1763_v41  ;;  %v1027_v58 = vadd.f32 %v1021_v38, %v1792_v36  ;;  %v1097_v38 = vld [vmem:[#allocation4 + $0x20] sm:$0xff] }
 0x7ac   :  { %v1054_v40 = vadd.f32 %v1838_v53, %v1048_v34  ;;  %v1052_v4 = vadd.f32 %v1049_v25, %v1046_v33 }
 0x7ad   :  { %v1029_v61 = vadd.f32 %v1023_v29, %v1766_v22  ;;  %v1033_v1 = vadd.f32 %v1027_v58, %v1798_v43 }
 0x7ae   :  { %v1060_v7 = vadd.f32 %v1056_v2, %v1054_v40  ;;  %v1058_v49 = vadd.f32 %v1055_v11, %v1052_v4 }
 0x7af   :  { %v1035_v9 = vadd.f32 %v1029_v61, %v1769_v54  ;;  %v1039_v41 = vadd.f32 %v1033_v1, %v1804_v18 }
 0x7b0   :  { %v1066_v59 = vadd.f32 %v1062_v56, %v1060_v7  ;;  %v1064_v40 = vadd.f32 %v1061_v26, %v1058_v49  ;;  %v1098_v7 = vld [vmem:[#allocation4 + $0x48] sm:$0xff] }
 0x7b1   :  { %v1041_v36 = vadd.f32 %v1035_v9, %v1778_v13  ;;  %v1045_v22 = vadd.f32 %v1039_v41, %v1810_v55  ;;  %v1085_v13 = vld [vmem:[#allocation4 + $0x1e] sm:$0xff] }
 0x7b2   :  { %v1072_v15 = vadd.f32 %v1068_v63, %v1066_v59  ;;  %v1070_v47 = vadd.f32 %v1067_v57, %v1064_v40 }
 0x7b3   :  { %v1047_v43 = vadd.f32 %v1041_v36, %v1784_v32  ;;  %v1051_v54 = vadd.f32 %v1045_v22, %v1816_v46  ;;  %v1091_v32 = vld [vmem:[#allocation4 + $0x1f] sm:$0xff] }
 0x7b4   :  { %v1078_v44 = vadd.f32 %v1074_v24, %v1072_v15  ;;  %v1076_v56 = vadd.f32 %v1073_v8, %v1070_v47 }
 0x7b5   :  { %v1053_v59 = vadd.f32 %v1047_v43, %v1790_v23  ;;  %v1057_v12 = vadd.f32 %v1051_v54, %v1822_v16 }
 0x7b6   :  { %v1084_v34 = vadd.f32 %v1080_v28, %v1078_v44  ;;  %v1082_v48 = vadd.f32 %v1079_v21, %v1076_v56 }
 0x7b7   :  { %v1059_v63 = vadd.f32 %v1053_v59, %v1795_v20  ;;  %v1063_v15 = vadd.f32 %v1057_v12, %v1828_v19 }
 0x7b8   :  { %v1090_v39 = vadd.f32 %v1086_v51, %v1084_v34  ;;  %v1088_v17 = vadd.f32 %v1085_v13, %v1082_v48 }
 0x7b9   :  { %v1065_v33 = vadd.f32 %v1059_v63, %v1802_v3  ;;  %v1069_v23 = vadd.f32 %v1063_v15, %v1834_v30 }
 0x7ba   :  { %v1096_v2 = vadd.f32 %v1092_v45, %v1090_v39  ;;  %v1094_v46 = vadd.f32 %v1091_v32, %v1088_v17 }
 0x7bb   :  { %v1071_v24 = vadd.f32 %v1065_v33, %v1808_v42  ;;  %v1075_v29 = vadd.f32 %v1069_v23, %v1840_v35 }
 0x7bc   :  { %v1102_v10 = vadd.f32 %v1098_v7, %v1096_v2  ;;  %v1100_v16 = vadd.f32 %v1097_v38, %v1094_v46 }
 0x7bd   :  { %v1077_v20 = vadd.f32 %v1071_v24, %v1814_v62  ;;  %v1081_v44 = vadd.f32 %v1075_v29, %v1845_v60 }
 0x7be   :  { %v1106_v18 = vmul.f32 0.04, %v1102_v10 }
 0x7bf   :  { %v1083_v19 = vadd.f32 %v1077_v20, %v1820_v37  ;;  %v1087_v4 = vadd.f32 %v1081_v44, %v1850_v50 }
 0x7c0   :  { %v1110_v55 = vsub.f32 %v1730_v52, %v1106_v18  ;;  %v1104_v52 = vmul.f32 0.04, %v1100_v16 }
 0x7c1   :  { %v1089_v58 = vadd.f32 %v1083_v19, %v1826_v31  ;;  %v1093_v30 = vadd.f32 %v1087_v4, %v1043_v27 }
 0x7c2   :  { %1114 = vst.msk [vmem:[#allocation14 + $0x18] sm:$0xff] %vm115_vm0, %v1110_v55  ;;  %v1108_v3 = vsub.f32 %v1736_v14, %v1104_v52 }
 0x7c3   :  { %v1095_v42 = vadd.f32 %v1089_v58, %v1832_v6  ;;  %v1099_v28 = vadd.f32 %v1093_v30, %v1049_v25 }
 0x7c4   :  { %1112 = vst.msk [vmem:[#allocation14 + $0x8] sm:$0xff] %vm115_vm0, %v1108_v3 }
 0x7c5   :  { %v1101_v35 = vadd.f32 %v1095_v42, %v1838_v53  ;;  %v1103_v62 = vmul.f32 0.04, %v1099_v28 }
 0x7c7   :  { %v1105_v60 = vmul.f32 0.04, %v1101_v35  ;;  %v1107_v37 = vsub.f32 %v1724_v5, %v1103_v62 }
 0x7c9   :  { %v1109_v14 = vsub.f32 %v1722_v0, %v1105_v60  ;;  %1111 = vst.msk [vmem:[#allocation14] sm:$0xff] %vm115_vm0, %v1107_v37 }
 0x7cb   :  { %1113 = vst.msk [vmem:[#allocation14 + $0x10] sm:$0xff] %vm115_vm0, %v1109_v14 }
 0x7cc   :  { %1467 = shalt.err (!%p1464_p10)
}
 0x7cd   :  { %s1468_s25 = scalar_lea.hbm %s1910_s5, 512 }
 0x7ce   :  { %p1469_p11 = scmp.ne.s32.totalorder %s1910_s5, %s1468_s25  ;;  %p1472_p12 = scmp.lt.u32.totalorder %s1468_s25, %s1910_s5 }
 0x7d0   :  { %p1474_p13 = pnand %p1472_p12, %p1469_p11 }
 0x7d2   :  { %1477 = shalt.err (!%p1474_p13)
}
 0x7d3   :  { %1126 = dma.vmem_to_hbm [thread:$0]  %s1121_s7, 512, %s1910_s5, [#allocation7], %s1493_s3, %s1493_s3, %s1494_s10  }
 0x7d4   :  { %1484 = dma.done.wait [#allocation7], 512  }
 0x7d5   :  { %1485 = vsyncadd [#allocation7], 4294966784 }
 0x7d6   :  { %1486 = dma.done.wait [#allocation16], 256  }
 0x7d7   :  { %1487 = vsyncadd [#allocation16], 4294967040 }
 0x7d8   :  { %1145 = vsyncpa [#allocation6], 1 }
 0x7d9   :  { %1146 = vsyncpa [#allocation9], 1 }
 0x7da   :  { %1147 = vsyncpa [#allocation12], 1 }
 0x7db   :  { %1148 = vsyncpa [#allocation7], 1 }
 0x7dc   :  { %1149 = vsyncpa [#allocation16], 1 }

</bundles_post_ra>
